<compile_context>
chip_gen: v7x
topology: tpu7x:2x2x1
jax: 0.10.0
libtpu: 0.0.40
codegen_flags: <defaults>
</compile_context>

<pallas_src>
import functools

import jax
import jax.numpy as jnp
from jax.experimental import pallas as pl
from jax.experimental.pallas import tpu as pltpu


# ----------------------------- in-kernel helpers -----------------------------

def _layer_norm(x, g, b, eps=1e-5):
    mu = jnp.mean(x, axis=-1, keepdims=True)
    var = jnp.mean((x - mu) ** 2, axis=-1, keepdims=True)
    return (x - mu) * jax.lax.rsqrt(var + eps) * g + b


def _mm(a, w):
    """MXU matmul: bf16 operands, f32 accumulation."""
    return jnp.dot(a.astype(jnp.bfloat16), w, preferred_element_type=jnp.float32)


# ----------------------------- Pallas kernels -------------------------------

_FFT_PARAM_ORDER = ("wq", "bq", "wk", "bk", "wv", "bv", "wo", "bo",
                    "w1", "b1", "w2", "b2", "g1", "be1", "g2", "be2")


def _fft_stack_kernel(lens_ref, x_ref, pos_ref, *refs,
                      n_heads, n_layers, out_layers, with_bridge):
    """Fused stack of FFT blocks for one batch element.

    The activation stays in VMEM across all layers; only the requested layer
    outputs are written back to HBM (stacked on axis 1 of o_ref).
    """
    if with_bridge:
        pre_w, pre_b = refs[0], refs[1]
        refs = refs[2:]
    (wq, bq, wk, bk, wv, bv, wo, bo,
     w1, b1, w2, b2, g1, be1, g2, be2, o_ref) = refs

    b = pl.program_id(0)
    L = lens_ref[b]

    x = x_ref[0].astype(jnp.float32)                       # (T, Din)
    if with_bridge:
        x = _mm(x, pre_w[...]) + pre_b[...]                # bridge_decoder linear
    x = x + pos_ref[...]                                   # positional encoding
    T, D = x.shape
    dk = D // n_heads
    scale = 1.0 / float(dk) ** 0.5

    # True = padded position; hoisted out of the layer / head loops.
    mask_k = jax.lax.broadcasted_iota(jnp.int32, (1, T), 1) >= L   # key mask
    mask_q = jax.lax.broadcasted_iota(jnp.int32, (T, 1), 0) >= L   # query mask

    # TODO(synk): whole-sequence (T,D) blocks + (T,T) scores are fine at these T
    # but need a KV-block (flash-style) grid axis on v7x (64 MiB VMEM/TC) once
    # max_seq_len grows large.
    out_slot = 0
    for l in range(n_layers):
        xb = x.astype(jnp.bfloat16)
        attn = jnp.zeros((T, D), jnp.float32)
        for h in range(n_heads):
            qh = _mm(xb, wq[l, h]) + bq[l, h]              # (T, dk)
            kh = _mm(xb, wk[l, h]) + bk[l, h]
            vh = _mm(xb, wv[l, h]) + bv[l, h]
            s = jax.lax.dot_general(
                qh.astype(jnp.bfloat16), kh.astype(jnp.bfloat16),
                (((1,), (1,)), ((), ())),
                preferred_element_type=jnp.float32) * scale        # (T, T)
            s = jnp.where(mask_k, -1e9, s)
            m = jnp.max(s, axis=-1, keepdims=True)
            e = jnp.exp(s - m)
            p = e * pl.reciprocal(jnp.sum(e, axis=-1, keepdims=True), approx=True)
            ctx = _mm(p, vh.astype(jnp.bfloat16))                   # (T, dk)
            # recombine heads through the output projection (== concat + W_o)
            attn = attn + _mm(ctx, wo[l, h])                        # (T, D)
        attn = attn + bo[l]

        h1 = _layer_norm(x + attn, g1[l], be1[l])
        ff = jnp.maximum(_mm(h1, w1[l]) + b1[l], 0.0)
        ff = _mm(ff, w2[l]) + b2[l]
        h2 = _layer_norm(h1 + ff, g2[l], be2[l])

        x = jnp.where(mask_q, 0.0, h2)
        if l in out_layers:
            o_ref[0, out_slot] = x.astype(o_ref.dtype)
            out_slot += 1


def _duration_kernel(lens_ref, x_ref, w1, b1, g1, be1, w2, b2, g2, be2, wlT, bl, o_ref):
    """Fused duration predictor: 2x (linear+relu+LN) + width-1 projection.
    The final projection is computed as (1,durf) x (T,durf)^T so the result is
    written lane-dense as (1, T) (T on the lane axis), not a (T, 1) column."""
    b = pl.program_id(0)
    L = lens_ref[b]
    x = x_ref[0]                                           # (T, D)
    T = x.shape[0]

    h = jnp.maximum(_mm(x, w1[...]) + b1[...], 0.0)
    h = _layer_norm(h, g1[...], be1[...])
    h = jnp.maximum(_mm(h, w2[...]) + b2[...], 0.0)
    h = _layer_norm(h, g2[...], be2[...])

    d = jax.lax.dot_general(
        wlT[...], h.astype(jnp.bfloat16),
        (((1,), (1,)), ((), ())),
        preferred_element_type=jnp.float32) + bl[...]       # (1, T)
    mask = jax.lax.broadcasted_iota(jnp.int32, (1, T), 1) >= L
    o_ref[0] = jnp.where(mask, 0.0, d).astype(o_ref.dtype)


def _proj_head_kernel(lens_ref, h_ref, wp, bp, wh, bh, out_ref, logit_ref):
    """Fused proj_out (linear+tanh) + head linear + target-mask on logits.
    Both outputs are produced from a single read of the hidden block."""
    b = pl.program_id(0)
    L = lens_ref[b]
    x = h_ref[0, 0].astype(jnp.bfloat16)                    # (T, D)
    T = x.shape[0]

    y = jnp.tanh(jnp.dot(x, wp[...], preferred_element_type=jnp.float32) + bp[...])
    lg = jnp.dot(x, wh[...], preferred_element_type=jnp.float32) + bh[...]
    mask = jax.lax.broadcasted_iota(jnp.int32, (T, 1), 0) >= L
    lg = jnp.where(mask, 0.0, lg)

    out_ref[0, 0] = y.astype(out_ref.dtype)
    logit_ref[0, 0] = lg.astype(logit_ref.dtype)


# ------------------------------ Pallas wrappers ------------------------------

def fft_stack(x, lens, pos, params, n_heads, out_layers, bridge=None):
    """x: (B, T, Din) -> (B, len(out_layers), T, D): outputs of selected layers."""
    B, T, Din = x.shape
    n_layers = params["wq"].shape[0]
    D = params["wo"].shape[-1]
    n_out = len(out_layers)

    plist = list(bridge) if bridge is not None else []
    plist += [params[n] for n in _FFT_PARAM_ORDER]

    def full(shape):
        n = len(shape)
        return pl.BlockSpec(shape, lambda b, lens, _n=n: (0,) * _n)

    in_specs = ([pl.BlockSpec((1, T, Din), lambda b, lens: (b, 0, 0)),
                 full(pos.shape)] + [full(a.shape) for a in plist])

    return pl.pallas_call(
        functools.partial(_fft_stack_kernel, n_heads=n_heads, n_layers=n_layers,
                          out_layers=tuple(out_layers),
                          with_bridge=bridge is not None),
        grid_spec=pltpu.PrefetchScalarGridSpec(
            num_scalar_prefetch=1, grid=(B,),
            in_specs=in_specs,
            out_specs=pl.BlockSpec((1, n_out, T, D), lambda b, lens: (b, 0, 0, 0))),
        out_shape=jax.ShapeDtypeStruct((B, n_out, T, D), jnp.float32),
        compiler_params=pltpu.CompilerParams(dimension_semantics=("parallel",)),
    )(lens, x, pos, *plist)


_DUR_PARAM_ORDER = ("w1", "b1", "g1", "be1", "w2", "b2", "g2", "be2", "wlT", "bl")


def duration_predictor(x, lens, params):
    B, T, D = x.shape
    plist = [params[n] for n in _DUR_PARAM_ORDER]

    def full(shape):
        n = len(shape)
        return pl.BlockSpec(shape, lambda b, lens, _n=n: (0,) * _n)

    in_specs = ([pl.BlockSpec((1, T, D), lambda b, lens: (b, 0, 0))] +
                [full(a.shape) for a in plist])
    out = pl.pallas_call(
        _duration_kernel,
        grid_spec=pltpu.PrefetchScalarGridSpec(
            num_scalar_prefetch=1, grid=(B,),
            in_specs=in_specs,
            out_specs=pl.BlockSpec((1, 1, T), lambda b, lens: (b, 0, 0))),
        out_shape=jax.ShapeDtypeStruct((B, 1, T), jnp.float32),
        compiler_params=pltpu.CompilerParams(dimension_semantics=("parallel",)),
    )(lens, x, *plist)
    return out[:, 0]                                    # (B, T)


def proj_and_head(hiddens, lens, wp, bp, wh, bh):
    B, NQ, T, D = hiddens.shape
    out_dim = wp.shape[1]
    v1 = wh.shape[1]

    def full(shape):
        n = len(shape)
        return pl.BlockSpec(shape, lambda b, q, lens, _n=n: (0,) * _n)

    in_specs = [pl.BlockSpec((1, 1, T, D), lambda b, q, lens: (b, q, 0, 0)),
                full(wp.shape), full(bp.shape), full(wh.shape), full(bh.shape)]
    out_specs = (pl.BlockSpec((1, 1, T, out_dim), lambda b, q, lens: (b, q, 0, 0)),
                 pl.BlockSpec((1, 1, T, v1), lambda b, q, lens: (b, q, 0, 0)))
    out_shape = (jax.ShapeDtypeStruct((B, NQ, T, out_dim), jnp.float32),
                 jax.ShapeDtypeStruct((B, NQ, T, v1), jnp.float32))

    return pl.pallas_call(
        _proj_head_kernel,
        grid_spec=pltpu.PrefetchScalarGridSpec(
            num_scalar_prefetch=1, grid=(B, NQ),
            in_specs=in_specs, out_specs=out_specs),
        out_shape=out_shape,
        compiler_params=pltpu.CompilerParams(
            dimension_semantics=("parallel", "parallel")),
    )(lens, hiddens, wp, bp, wh, bh)


# ----------------------------- JAX glue helpers ------------------------------

def get_mask_from_lengths(lengths, max_len):
    ids = jnp.arange(max_len)[None, :]
    return ids >= lengths[:, None]          # True = padded


def sinusoid_table(n_pos, d):
    pos = jnp.arange(n_pos, dtype=jnp.float32)[:, None]
    i = jnp.arange(d, dtype=jnp.float32)[None, :]
    angle = pos / jnp.power(10000.0, 2.0 * jnp.floor(i / 2.0) / d)
    even = (jnp.arange(d) % 2 == 0)[None, :]
    return jnp.where(even, jnp.sin(angle), jnp.cos(angle))


def length_regulate(x, durations, max_tgt_len):
    # expand source frames by integer durations (data-dependent gather; plain JAX)
    cum = jnp.cumsum(durations, axis=1)                        # (B, T_src)
    frame = jnp.arange(max_tgt_len)                            # (T_tgt,)
    idx = jnp.sum(frame[None, :, None] >= cum[:, None, :], axis=-1)
    idx = jnp.clip(idx, 0, x.shape[1] - 1)
    return jnp.take_along_axis(x, idx[..., None], axis=1)


# ------------------------------ Parameter init -------------------------------

def _w(key, shape, scale=0.08):
    return jax.random.normal(key, shape, jnp.float32) * scale


def _zeros(shape):
    return jnp.zeros(shape, jnp.float32)


def _ones(shape):
    return jnp.ones(shape, jnp.float32)


def init_fft_layer(key, d, ff):
    ks = jax.random.split(key, 6)
    return {
        "wq": _w(ks[0], (d, d)), "bq": _zeros((1, d)),
        "wk": _w(ks[1], (d, d)), "bk": _zeros((1, d)),
        "wv": _w(ks[2], (d, d)), "bv": _zeros((1, d)),
        "wo": _w(ks[3], (d, d)), "bo": _zeros((1, d)),
        "w1": _w(ks[4], (d, ff)), "b1": _zeros((1, ff)),
        "w2": _w(ks[5], (ff, d)), "b2": _zeros((1, d)),
        "g1": _ones((1, d)), "be1": _zeros((1, d)),
        "g2": _ones((1, d)), "be2": _zeros((1, d)),
    }


def stack_fft_layers(layers, n_heads):
    """Stack per-layer params on a leading axis and split the attention
    projections per head onto their own leading axis.  Matmul weights are cast
    to bf16 (MXU fast path); biases / layernorm params stay f32."""
    nl = len(layers)
    d = layers[0]["wq"].shape[0]
    dk = d // n_heads
    st = lambda name: jnp.stack([l[name] for l in layers], 0)

    out = {}
    for n in ("wq", "wk", "wv"):
        out[n] = (st(n).reshape(nl, d, n_heads, dk)
                  .transpose(0, 2, 1, 3).astype(jnp.bfloat16))            # (L,H,D,dk)
    for n in ("bq", "bk", "bv"):
        out[n] = st(n).reshape(nl, 1, n_heads, dk).transpose(0, 2, 1, 3)  # (L,H,1,dk)
    out["wo"] = st("wo").reshape(nl, n_heads, dk, d).astype(jnp.bfloat16)  # (L,H,dk,D)
    out["bo"] = st("bo")
    out["w1"] = st("w1").astype(jnp.bfloat16)
    out["b1"] = st("b1")
    out["w2"] = st("w2").astype(jnp.bfloat16)
    out["b2"] = st("b2")
    for n in ("g1", "be1", "g2", "be2"):
        out[n] = st(n)
    return out


# -------------------------------- Model --------------------------------------

class CodesGenerator:
    def __init__(self, config, key):
        self.config = config
        enc_h = config["transformer"]["encoder_hidden"]
        dec_h = config["transformer"]["decoder_hidden"]
        out_dim = config["transformer"]["output_dim"]
        vocab = config["codec"]["vocab_size"]
        nq = config["codec"]["n_quantizers"]
        ff = config["transformer"]["conv_filter_size"]
        durf = config["variance_predictor"]["filter_size"]
        src_vocab = config["transformer"]["src_vocab_size"]
        self.n_heads = config["transformer"]["n_heads"]
        self.n_quantizers = nq

        ks = jax.random.split(key, 12 + nq)
        self.emb = _w(ks[0], (src_vocab, enc_h), 0.1)
        # separate sinusoid tables at encoder / decoder widths (matches the
        # PyTorch Encoder / Decoder position_enc buffers).
        self.pos_enc = sinusoid_table(config["max_seq_len"], enc_h)
        self.pos_dec = sinusoid_table(config["max_seq_len"], dec_h)

        self.enc_stack = stack_fft_layers([init_fft_layer(ks[1], enc_h, ff)],
                                          self.n_heads)
        self.dur = {
            "w1": _w(ks[2], (enc_h, durf)).astype(jnp.bfloat16), "b1": _zeros((1, durf)),
            "g1": _ones((1, durf)), "be1": _zeros((1, durf)),
            "w2": _w(ks[3], (durf, durf)).astype(jnp.bfloat16), "b2": _zeros((1, durf)),
            "g2": _ones((1, durf)), "be2": _zeros((1, durf)),
            # stored transposed, (1, durf): kernel writes a lane-dense (1, T) row
            "wlT": _w(ks[4], (1, durf)).astype(jnp.bfloat16), "bl": _zeros((1, 1)),
        }
        self.bridge_w = _w(ks[5], (enc_h, dec_h)).astype(jnp.bfloat16)
        self.bridge_b = _zeros((1, dec_h))
        # shared decoder layer followed by the nq estimator layers, all stacked
        # for the single fused decoder-stack kernel.
        dec_layers = [init_fft_layer(ks[6], dec_h, ff)]
        dec_layers += [init_fft_layer(ks[7 + i], dec_h, ff) for i in range(nq)]
        self.dec_stack = stack_fft_layers(dec_layers, self.n_heads)
        self.proj_w = _w(ks[7 + nq], (dec_h, out_dim)).astype(jnp.bfloat16)
        self.proj_b = _zeros((1, out_dim))
        self.head_w = _w(ks[8 + nq], (dec_h, vocab + 1)).astype(jnp.bfloat16)
        self.head_b = _zeros((1, vocab + 1))

    def forward(self, texts, src_lens, max_src_len, tgt_lens=None, max_tgt_len=None,
                d_targets=None, d_control=1.0):
        src_masks = get_mask_from_lengths(src_lens, max_src_len)
        tgt_masks = (get_mask_from_lengths(tgt_lens, max_tgt_len)
                     if tgt_lens is not None else None)

        # ---- Encoder: embedding gather (JAX) + [pos-add + FFT block] (Pallas) ----
        x = jnp.take(self.emb, texts, axis=0)                     # (B, T_src, enc_h)
        enc = fft_stack(x, src_lens, self.pos_enc[:max_src_len], self.enc_stack,
                        self.n_heads, out_layers=(0,))[:, 0]      # (B, T_src, enc_h)

        # ---- Variance adaptor: duration predictor (Pallas) + length regulator ----
        log_d_predictions = duration_predictor(enc, src_lens, self.dur)   # (B, T_src)
        if d_targets is not None:
            d_rounded = d_targets
            x = length_regulate(enc, d_targets, max_tgt_len)      # (B, T_tgt, enc_h)
        else:
            # TODO(synk): inference-time duration rounding (with d_control scaling)
            # produces a data-dependent target length (dynamic shape); only the
            # teacher-forced path is implemented.
            raise NotImplementedError("inference-time duration path not supported")

        # ---- bridge linear + decoder pos-add + shared decoder + nq estimator
        #      layers, all fused into ONE pallas_call (activation stays in VMEM) ----
        Tt = x.shape[1]
        hiddens = fft_stack(
            x, tgt_lens, self.pos_dec[:Tt], self.dec_stack, self.n_heads,
            out_layers=tuple(range(1, 1 + self.n_quantizers)),
            bridge=(self.bridge_w, self.bridge_b))                # (B, nq, Tt, dec_h)

        # ---- fused proj_out(tanh) + head + logits masking (Pallas) ----
        outputs, logits = proj_and_head(hiddens, tgt_lens,
                                        self.proj_w, self.proj_b,
                                        self.head_w, self.head_b)
        logits = jnp.transpose(logits, (0, 3, 1, 2))              # (B, vocab+1, nq, Tt)

        return (outputs, logits, log_d_predictions, d_rounded,
                src_masks, tgt_masks, src_lens, tgt_lens)


# --------------------------------- Main ---------------------------------------

if __name__ == "__main__":
    config = {
        "transformer": {
            "encoder_hidden": 32,
            "decoder_hidden": 32,
            "output_dim": 16,
            "n_heads": 2,
            "conv_filter_size": 64,
            "src_vocab_size": 24,
        },
        "codec": {"vocab_size": 10, "n_quantizers": 2},
        "variance_predictor": {"filter_size": 32},
        "max_seq_len": 32,
    }

    key = jax.random.PRNGKey(0)
    k_param, k_text = jax.random.split(key)
    model = CodesGenerator(config, k_param)

    B, T_SRC, MAX_TGT = 2, 8, 16
    texts = jax.random.randint(
        k_text, (B, T_SRC), 1, config["transformer"]["src_vocab_size"]).astype(jnp.int32)
    src_lens = jnp.array([8, 6], jnp.int32)
    tgt_lens = jnp.array([16, 12], jnp.int32)
    d_targets = jnp.array([[2] * 8, [2] * 6 + [0] * 2], jnp.int32)

    outs = model.forward(texts, src_lens, T_SRC,
                         tgt_lens=tgt_lens, max_tgt_len=MAX_TGT,
                         d_targets=d_targets, d_control=1.0)
    outs = jax.tree_util.tree_map(jax.block_until_ready, outs)

    # light sanity checks on shapes
    outputs, logits, log_d = outs[0], outs[1], outs[2]
    assert outputs.shape == (B, 2, MAX_TGT, 16)
    assert logits.shape == (B, 11, 2, MAX_TGT)
    assert log_d.shape == (B, T_SRC)
    print("KERNEL_OK")
</pallas_src>

<mosaic_0001>
module attributes {stable_mosaic.version = 11 : i64} {
  func.func @_fft_stack_kernel(%arg0: i32, %arg1: memref<2xi32, #tpu.memory_space<smem>>, %arg2: memref<1x8x32xf32, #tpu.memory_space<vmem>>, %arg3: memref<8x32xf32, #tpu.memory_space<vmem>>, %arg4: memref<1x2x32x16xbf16, #tpu.memory_space<vmem>>, %arg5: memref<1x2x1x16xf32, #tpu.memory_space<vmem>>, %arg6: memref<1x2x32x16xbf16, #tpu.memory_space<vmem>>, %arg7: memref<1x2x1x16xf32, #tpu.memory_space<vmem>>, %arg8: memref<1x2x32x16xbf16, #tpu.memory_space<vmem>>, %arg9: memref<1x2x1x16xf32, #tpu.memory_space<vmem>>, %arg10: memref<1x2x16x32xbf16, #tpu.memory_space<vmem>>, %arg11: memref<1x1x32xf32, #tpu.memory_space<vmem>>, %arg12: memref<1x32x64xbf16, #tpu.memory_space<vmem>>, %arg13: memref<1x1x64xf32, #tpu.memory_space<vmem>>, %arg14: memref<1x64x32xbf16, #tpu.memory_space<vmem>>, %arg15: memref<1x1x32xf32, #tpu.memory_space<vmem>>, %arg16: memref<1x1x32xf32, #tpu.memory_space<vmem>>, %arg17: memref<1x1x32xf32, #tpu.memory_space<vmem>>, %arg18: memref<1x1x32xf32, #tpu.memory_space<vmem>>, %arg19: memref<1x1x32xf32, #tpu.memory_space<vmem>>, %arg20: memref<1x1x8x32xf32, #tpu.memory_space<vmem>>) attributes {dimension_semantics = [#tpu.dimension_semantics<parallel>], iteration_bounds = array<i64: 2>, scalar_prefetch = 1 : i64, scratch_operands = 0 : i64, tpu.core_type = #tpu.core_type<tc>, window_params = [{transform_indices = @transform_0, window_bounds = array<i64: 1, 8, 32>}, {pipeline_mode = #tpu.pipeline_mode<synchronous>, transform_indices = @transform_1, window_bounds = array<i64: 8, 32>}, {pipeline_mode = #tpu.pipeline_mode<synchronous>, transform_indices = @transform_2, window_bounds = array<i64: 1, 2, 32, 16>}, {pipeline_mode = #tpu.pipeline_mode<synchronous>, transform_indices = @transform_3, window_bounds = array<i64: 1, 2, 1, 16>}, {pipeline_mode = #tpu.pipeline_mode<synchronous>, transform_indices = @transform_4, window_bounds = array<i64: 1, 2, 32, 16>}, {pipeline_mode = #tpu.pipeline_mode<synchronous>, transform_indices = @transform_5, window_bounds = array<i64: 1, 2, 1, 16>}, {pipeline_mode = #tpu.pipeline_mode<synchronous>, transform_indices = @transform_6, window_bounds = array<i64: 1, 2, 32, 16>}, {pipeline_mode = #tpu.pipeline_mode<synchronous>, transform_indices = @transform_7, window_bounds = array<i64: 1, 2, 1, 16>}, {pipeline_mode = #tpu.pipeline_mode<synchronous>, transform_indices = @transform_8, window_bounds = array<i64: 1, 2, 16, 32>}, {pipeline_mode = #tpu.pipeline_mode<synchronous>, transform_indices = @transform_9, window_bounds = array<i64: 1, 1, 32>}, {pipeline_mode = #tpu.pipeline_mode<synchronous>, transform_indices = @transform_10, window_bounds = array<i64: 1, 32, 64>}, {pipeline_mode = #tpu.pipeline_mode<synchronous>, transform_indices = @transform_11, window_bounds = array<i64: 1, 1, 64>}, {pipeline_mode = #tpu.pipeline_mode<synchronous>, transform_indices = @transform_12, window_bounds = array<i64: 1, 64, 32>}, {pipeline_mode = #tpu.pipeline_mode<synchronous>, transform_indices = @transform_13, window_bounds = array<i64: 1, 1, 32>}, {pipeline_mode = #tpu.pipeline_mode<synchronous>, transform_indices = @transform_14, window_bounds = array<i64: 1, 1, 32>}, {pipeline_mode = #tpu.pipeline_mode<synchronous>, transform_indices = @transform_15, window_bounds = array<i64: 1, 1, 32>}, {pipeline_mode = #tpu.pipeline_mode<synchronous>, transform_indices = @transform_16, window_bounds = array<i64: 1, 1, 32>}, {pipeline_mode = #tpu.pipeline_mode<synchronous>, transform_indices = @transform_17, window_bounds = array<i64: 1, 1, 32>}, {transform_indices = @transform_18, window_bounds = array<i64: 1, 1, 8, 32>}]} {
    %0 = arith.index_cast %arg0 : i32 to index
    %1 = memref.load %arg1[%0] : memref<2xi32, #tpu.memory_space<smem>>
    %c0 = arith.constant 0 : index
    %c0_0 = arith.constant 0 : index
    %c0_1 = arith.constant 0 : index
    %2 = vector.load %arg2[%c0, %c0_0, %c0_1] : memref<1x8x32xf32, #tpu.memory_space<vmem>>, vector<1x8x32xf32>
    %3 = vector.shape_cast %2 : vector<1x8x32xf32> to vector<8x32xf32>
    %c0_2 = arith.constant 0 : index
    %c0_3 = arith.constant 0 : index
    %4 = vector.load %arg3[%c0_2, %c0_3] : memref<8x32xf32, #tpu.memory_space<vmem>>, vector<8x32xf32>
    %5 = arith.addf %3, %4 : vector<8x32xf32>
    %6 = tpu.iota {dimensions = array<i32: 1>} : vector<1x8xi32>
    %7 = vector.broadcast %1 : i32 to vector<1x8xi32>
    %8 = arith.cmpi sge, %6, %7 : vector<1x8xi32>
    %9 = tpu.iota {dimensions = array<i32: 0>} : vector<8x1xi32>
    %10 = vector.broadcast %1 : i32 to vector<8x1xi32>
    %11 = arith.cmpi sge, %9, %10 : vector<8x1xi32>
    %12 = arith.truncf %5 : vector<8x32xf32> to vector<8x32xbf16>
    %cst = arith.constant 0.000000e+00 : f32
    %13 = vector.broadcast %cst : f32 to vector<8x32xf32>
    %c0_4 = arith.constant 0 : index
    %c0_5 = arith.constant 0 : index
    %c0_6 = arith.constant 0 : index
    %c0_7 = arith.constant 0 : index
    %14 = vector.load %arg4[%c0_4, %c0_5, %c0_6, %c0_7] : memref<1x2x32x16xbf16, #tpu.memory_space<vmem>>, vector<1x1x32x16xbf16>
    %15 = vector.shape_cast %14 : vector<1x1x32x16xbf16> to vector<32x16xbf16>
    %cst_8 = arith.constant dense<0.000000e+00> : vector<8x16xf32>
    %16 = tpu.matmul %12, %15, %cst_8 {dimension_numbers = #tpu.dot_dimension_numbers<[1], [0], [0], [1], [0, 0, 1, 1], [], []>} : vector<8x32xbf16>, vector<32x16xbf16>, vector<8x16xf32> -> vector<8x16xf32>
    %c0_9 = arith.constant 0 : index
    %c0_10 = arith.constant 0 : index
    %c0_11 = arith.constant 0 : index
    %c0_12 = arith.constant 0 : index
    %17 = vector.load %arg5[%c0_9, %c0_10, %c0_11, %c0_12] : memref<1x2x1x16xf32, #tpu.memory_space<vmem>>, vector<1x1x1x16xf32>
    %18 = vector.shape_cast %17 : vector<1x1x1x16xf32> to vector<1x16xf32>
    %19 = vector.broadcast %18 : vector<1x16xf32> to vector<8x16xf32>
    %20 = arith.addf %16, %19 : vector<8x16xf32>
    %c0_13 = arith.constant 0 : index
    %c0_14 = arith.constant 0 : index
    %c0_15 = arith.constant 0 : index
    %c0_16 = arith.constant 0 : index
    %21 = vector.load %arg6[%c0_13, %c0_14, %c0_15, %c0_16] : memref<1x2x32x16xbf16, #tpu.memory_space<vmem>>, vector<1x1x32x16xbf16>
    %22 = vector.shape_cast %21 : vector<1x1x32x16xbf16> to vector<32x16xbf16>
    %cst_17 = arith.constant dense<0.000000e+00> : vector<8x16xf32>
    %23 = tpu.matmul %12, %22, %cst_17 {dimension_numbers = #tpu.dot_dimension_numbers<[1], [0], [0], [1], [0, 0, 1, 1], [], []>} : vector<8x32xbf16>, vector<32x16xbf16>, vector<8x16xf32> -> vector<8x16xf32>
    %c0_18 = arith.constant 0 : index
    %c0_19 = arith.constant 0 : index
    %c0_20 = arith.constant 0 : index
    %c0_21 = arith.constant 0 : index
    %24 = vector.load %arg7[%c0_18, %c0_19, %c0_20, %c0_21] : memref<1x2x1x16xf32, #tpu.memory_space<vmem>>, vector<1x1x1x16xf32>
    %25 = vector.shape_cast %24 : vector<1x1x1x16xf32> to vector<1x16xf32>
    %26 = vector.broadcast %25 : vector<1x16xf32> to vector<8x16xf32>
    %27 = arith.addf %23, %26 : vector<8x16xf32>
    %c0_22 = arith.constant 0 : index
    %c0_23 = arith.constant 0 : index
    %c0_24 = arith.constant 0 : index
    %c0_25 = arith.constant 0 : index
    %28 = vector.load %arg8[%c0_22, %c0_23, %c0_24, %c0_25] : memref<1x2x32x16xbf16, #tpu.memory_space<vmem>>, vector<1x1x32x16xbf16>
    %29 = vector.shape_cast %28 : vector<1x1x32x16xbf16> to vector<32x16xbf16>
    %cst_26 = arith.constant dense<0.000000e+00> : vector<8x16xf32>
    %30 = tpu.matmul %12, %29, %cst_26 {dimension_numbers = #tpu.dot_dimension_numbers<[1], [0], [0], [1], [0, 0, 1, 1], [], []>} : vector<8x32xbf16>, vector<32x16xbf16>, vector<8x16xf32> -> vector<8x16xf32>
    %c0_27 = arith.constant 0 : index
    %c0_28 = arith.constant 0 : index
    %c0_29 = arith.constant 0 : index
    %c0_30 = arith.constant 0 : index
    %31 = vector.load %arg9[%c0_27, %c0_28, %c0_29, %c0_30] : memref<1x2x1x16xf32, #tpu.memory_space<vmem>>, vector<1x1x1x16xf32>
    %32 = vector.shape_cast %31 : vector<1x1x1x16xf32> to vector<1x16xf32>
    %33 = vector.broadcast %32 : vector<1x16xf32> to vector<8x16xf32>
    %34 = arith.addf %30, %33 : vector<8x16xf32>
    %35 = arith.truncf %20 : vector<8x16xf32> to vector<8x16xbf16>
    %36 = arith.truncf %27 : vector<8x16xf32> to vector<8x16xbf16>
    %cst_31 = arith.constant dense<0.000000e+00> : vector<8x8xf32>
    %37 = tpu.matmul %35, %36, %cst_31 {dimension_numbers = #tpu.dot_dimension_numbers<[1], [1], [0], [0], [0, 0, 1, 0], [], []>} : vector<8x16xbf16>, vector<8x16xbf16>, vector<8x8xf32> -> vector<8x8xf32>
    %cst_32 = arith.constant 2.500000e-01 : f32
    %38 = vector.broadcast %cst_32 : f32 to vector<8x8xf32>
    %39 = arith.mulf %37, %38 : vector<8x8xf32>
    %cst_33 = arith.constant -1.000000e+09 : f32
    %40 = vector.shape_cast %8 : vector<1x8xi1> to vector<1x8xi1>
    %41 = vector.broadcast %40 : vector<1x8xi1> to vector<8x8xi1>
    %42 = vector.broadcast %cst_33 : f32 to vector<8x8xf32>
    %43 = arith.select %41, %42, %39 : vector<8x8xi1>, vector<8x8xf32>
    %cst_34 = arith.constant dense<0xFF800000> : vector<8xf32>
    %44 = vector.multi_reduction <maximumf>, %43, %cst_34 [1] : vector<8x8xf32> to vector<8xf32>
    %45 = vector.shape_cast %44 : vector<8xf32> to vector<8x1xf32>
    %46 = vector.broadcast %45 : vector<8x1xf32> to vector<8x8xf32>
    %47 = arith.subf %43, %46 : vector<8x8xf32>
    %48 = math.exp %47 : vector<8x8xf32>
    %cst_35 = arith.constant dense<0.000000e+00> : vector<8xf32>
    %49 = vector.multi_reduction <add>, %48, %cst_35 [1] : vector<8x8xf32> to vector<8xf32>
    %50 = vector.shape_cast %49 : vector<8xf32> to vector<8x1xf32>
    %51 = tpu.reciprocal %50 {approx = true} : vector<8x1xf32> -> vector<8x1xf32>
    %52 = vector.broadcast %51 : vector<8x1xf32> to vector<8x8xf32>
    %53 = arith.mulf %48, %52 : vector<8x8xf32>
    %54 = arith.truncf %34 : vector<8x16xf32> to vector<8x16xbf16>
    %55 = arith.truncf %53 : vector<8x8xf32> to vector<8x8xbf16>
    %cst_36 = arith.constant dense<0.000000e+00> : vector<8x16xf32>
    %56 = tpu.matmul %55, %54, %cst_36 {dimension_numbers = #tpu.dot_dimension_numbers<[1], [0], [0], [1], [0, 0, 1, 1], [], []>} : vector<8x8xbf16>, vector<8x16xbf16>, vector<8x16xf32> -> vector<8x16xf32>
    %c0_37 = arith.constant 0 : index
    %c0_38 = arith.constant 0 : index
    %c0_39 = arith.constant 0 : index
    %c0_40 = arith.constant 0 : index
    %57 = vector.load %arg10[%c0_37, %c0_38, %c0_39, %c0_40] : memref<1x2x16x32xbf16, #tpu.memory_space<vmem>>, vector<1x1x16x32xbf16>
    %58 = vector.shape_cast %57 : vector<1x1x16x32xbf16> to vector<16x32xbf16>
    %59 = arith.truncf %56 : vector<8x16xf32> to vector<8x16xbf16>
    %cst_41 = arith.constant dense<0.000000e+00> : vector<8x32xf32>
    %60 = tpu.matmul %59, %58, %cst_41 {dimension_numbers = #tpu.dot_dimension_numbers<[1], [0], [0], [1], [0, 0, 1, 1], [], []>} : vector<8x16xbf16>, vector<16x32xbf16>, vector<8x32xf32> -> vector<8x32xf32>
    %61 = arith.addf %13, %60 : vector<8x32xf32>
    %c0_42 = arith.constant 0 : index
    %c1 = arith.constant 1 : index
    %c0_43 = arith.constant 0 : index
    %c0_44 = arith.constant 0 : index
    %62 = vector.load %arg4[%c0_42, %c1, %c0_43, %c0_44] : memref<1x2x32x16xbf16, #tpu.memory_space<vmem>>, vector<1x1x32x16xbf16>
    %63 = vector.shape_cast %62 : vector<1x1x32x16xbf16> to vector<32x16xbf16>
    %cst_45 = arith.constant dense<0.000000e+00> : vector<8x16xf32>
    %64 = tpu.matmul %12, %63, %cst_45 {dimension_numbers = #tpu.dot_dimension_numbers<[1], [0], [0], [1], [0, 0, 1, 1], [], []>} : vector<8x32xbf16>, vector<32x16xbf16>, vector<8x16xf32> -> vector<8x16xf32>
    %c0_46 = arith.constant 0 : index
    %c1_47 = arith.constant 1 : index
    %c0_48 = arith.constant 0 : index
    %c0_49 = arith.constant 0 : index
    %65 = vector.load %arg5[%c0_46, %c1_47, %c0_48, %c0_49] : memref<1x2x1x16xf32, #tpu.memory_space<vmem>>, vector<1x1x1x16xf32>
    %66 = vector.shape_cast %65 : vector<1x1x1x16xf32> to vector<1x16xf32>
    %67 = vector.broadcast %66 : vector<1x16xf32> to vector<8x16xf32>
    %68 = arith.addf %64, %67 : vector<8x16xf32>
    %c0_50 = arith.constant 0 : index
    %c1_51 = arith.constant 1 : index
    %c0_52 = arith.constant 0 : index
    %c0_53 = arith.constant 0 : index
    %69 = vector.load %arg6[%c0_50, %c1_51, %c0_52, %c0_53] : memref<1x2x32x16xbf16, #tpu.memory_space<vmem>>, vector<1x1x32x16xbf16>
    %70 = vector.shape_cast %69 : vector<1x1x32x16xbf16> to vector<32x16xbf16>
    %cst_54 = arith.constant dense<0.000000e+00> : vector<8x16xf32>
    %71 = tpu.matmul %12, %70, %cst_54 {dimension_numbers = #tpu.dot_dimension_numbers<[1], [0], [0], [1], [0, 0, 1, 1], [], []>} : vector<8x32xbf16>, vector<32x16xbf16>, vector<8x16xf32> -> vector<8x16xf32>
    %c0_55 = arith.constant 0 : index
    %c1_56 = arith.constant 1 : index
    %c0_57 = arith.constant 0 : index
    %c0_58 = arith.constant 0 : index
    %72 = vector.load %arg7[%c0_55, %c1_56, %c0_57, %c0_58] : memref<1x2x1x16xf32, #tpu.memory_space<vmem>>, vector<1x1x1x16xf32>
    %73 = vector.shape_cast %72 : vector<1x1x1x16xf32> to vector<1x16xf32>
    %74 = vector.broadcast %73 : vector<1x16xf32> to vector<8x16xf32>
    %75 = arith.addf %71, %74 : vector<8x16xf32>
    %c0_59 = arith.constant 0 : index
    %c1_60 = arith.constant 1 : index
    %c0_61 = arith.constant 0 : index
    %c0_62 = arith.constant 0 : index
    %76 = vector.load %arg8[%c0_59, %c1_60, %c0_61, %c0_62] : memref<1x2x32x16xbf16, #tpu.memory_space<vmem>>, vector<1x1x32x16xbf16>
    %77 = vector.shape_cast %76 : vector<1x1x32x16xbf16> to vector<32x16xbf16>
    %cst_63 = arith.constant dense<0.000000e+00> : vector<8x16xf32>
    %78 = tpu.matmul %12, %77, %cst_63 {dimension_numbers = #tpu.dot_dimension_numbers<[1], [0], [0], [1], [0, 0, 1, 1], [], []>} : vector<8x32xbf16>, vector<32x16xbf16>, vector<8x16xf32> -> vector<8x16xf32>
    %c0_64 = arith.constant 0 : index
    %c1_65 = arith.constant 1 : index
    %c0_66 = arith.constant 0 : index
    %c0_67 = arith.constant 0 : index
    %79 = vector.load %arg9[%c0_64, %c1_65, %c0_66, %c0_67] : memref<1x2x1x16xf32, #tpu.memory_space<vmem>>, vector<1x1x1x16xf32>
    %80 = vector.shape_cast %79 : vector<1x1x1x16xf32> to vector<1x16xf32>
    %81 = vector.broadcast %80 : vector<1x16xf32> to vector<8x16xf32>
    %82 = arith.addf %78, %81 : vector<8x16xf32>
    %83 = arith.truncf %68 : vector<8x16xf32> to vector<8x16xbf16>
    %84 = arith.truncf %75 : vector<8x16xf32> to vector<8x16xbf16>
    %cst_68 = arith.constant dense<0.000000e+00> : vector<8x8xf32>
    %85 = tpu.matmul %83, %84, %cst_68 {dimension_numbers = #tpu.dot_dimension_numbers<[1], [1], [0], [0], [0, 0, 1, 0], [], []>} : vector<8x16xbf16>, vector<8x16xbf16>, vector<8x8xf32> -> vector<8x8xf32>
    %cst_69 = arith.constant 2.500000e-01 : f32
    %86 = vector.broadcast %cst_69 : f32 to vector<8x8xf32>
    %87 = arith.mulf %85, %86 : vector<8x8xf32>
    %cst_70 = arith.constant -1.000000e+09 : f32
    %88 = vector.shape_cast %8 : vector<1x8xi1> to vector<1x8xi1>
    %89 = vector.broadcast %88 : vector<1x8xi1> to vector<8x8xi1>
    %90 = vector.broadcast %cst_70 : f32 to vector<8x8xf32>
    %91 = arith.select %89, %90, %87 : vector<8x8xi1>, vector<8x8xf32>
    %cst_71 = arith.constant dense<0xFF800000> : vector<8xf32>
    %92 = vector.multi_reduction <maximumf>, %91, %cst_71 [1] : vector<8x8xf32> to vector<8xf32>
    %93 = vector.shape_cast %92 : vector<8xf32> to vector<8x1xf32>
    %94 = vector.broadcast %93 : vector<8x1xf32> to vector<8x8xf32>
    %95 = arith.subf %91, %94 : vector<8x8xf32>
    %96 = math.exp %95 : vector<8x8xf32>
    %cst_72 = arith.constant dense<0.000000e+00> : vector<8xf32>
    %97 = vector.multi_reduction <add>, %96, %cst_72 [1] : vector<8x8xf32> to vector<8xf32>
    %98 = vector.shape_cast %97 : vector<8xf32> to vector<8x1xf32>
    %99 = tpu.reciprocal %98 {approx = true} : vector<8x1xf32> -> vector<8x1xf32>
    %100 = vector.broadcast %99 : vector<8x1xf32> to vector<8x8xf32>
    %101 = arith.mulf %96, %100 : vector<8x8xf32>
    %102 = arith.truncf %82 : vector<8x16xf32> to vector<8x16xbf16>
    %103 = arith.truncf %101 : vector<8x8xf32> to vector<8x8xbf16>
    %cst_73 = arith.constant dense<0.000000e+00> : vector<8x16xf32>
    %104 = tpu.matmul %103, %102, %cst_73 {dimension_numbers = #tpu.dot_dimension_numbers<[1], [0], [0], [1], [0, 0, 1, 1], [], []>} : vector<8x8xbf16>, vector<8x16xbf16>, vector<8x16xf32> -> vector<8x16xf32>
    %c0_74 = arith.constant 0 : index
    %c1_75 = arith.constant 1 : index
    %c0_76 = arith.constant 0 : index
    %c0_77 = arith.constant 0 : index
    %105 = vector.load %arg10[%c0_74, %c1_75, %c0_76, %c0_77] : memref<1x2x16x32xbf16, #tpu.memory_space<vmem>>, vector<1x1x16x32xbf16>
    %106 = vector.shape_cast %105 : vector<1x1x16x32xbf16> to vector<16x32xbf16>
    %107 = arith.truncf %104 : vector<8x16xf32> to vector<8x16xbf16>
    %cst_78 = arith.constant dense<0.000000e+00> : vector<8x32xf32>
    %108 = tpu.matmul %107, %106, %cst_78 {dimension_numbers = #tpu.dot_dimension_numbers<[1], [0], [0], [1], [0, 0, 1, 1], [], []>} : vector<8x16xbf16>, vector<16x32xbf16>, vector<8x32xf32> -> vector<8x32xf32>
    %109 = arith.addf %61, %108 : vector<8x32xf32>
    %c0_79 = arith.constant 0 : index
    %c0_80 = arith.constant 0 : index
    %c0_81 = arith.constant 0 : index
    %110 = vector.load %arg11[%c0_79, %c0_80, %c0_81] : memref<1x1x32xf32, #tpu.memory_space<vmem>>, vector<1x1x32xf32>
    %111 = vector.shape_cast %110 : vector<1x1x32xf32> to vector<1x32xf32>
    %112 = vector.broadcast %111 : vector<1x32xf32> to vector<8x32xf32>
    %113 = arith.addf %109, %112 : vector<8x32xf32>
    %114 = arith.addf %5, %113 : vector<8x32xf32>
    %c0_82 = arith.constant 0 : index
    %c0_83 = arith.constant 0 : index
    %c0_84 = arith.constant 0 : index
    %115 = vector.load %arg16[%c0_82, %c0_83, %c0_84] : memref<1x1x32xf32, #tpu.memory_space<vmem>>, vector<1x1x32xf32>
    %116 = vector.shape_cast %115 : vector<1x1x32xf32> to vector<1x32xf32>
    %c0_85 = arith.constant 0 : index
    %c0_86 = arith.constant 0 : index
    %c0_87 = arith.constant 0 : index
    %117 = vector.load %arg17[%c0_85, %c0_86, %c0_87] : memref<1x1x32xf32, #tpu.memory_space<vmem>>, vector<1x1x32xf32>
    %118 = vector.shape_cast %117 : vector<1x1x32xf32> to vector<1x32xf32>
    %cst_88 = arith.constant dense<0.000000e+00> : vector<8xf32>
    %119 = vector.multi_reduction <add>, %114, %cst_88 [1] : vector<8x32xf32> to vector<8xf32>
    %120 = vector.shape_cast %119 : vector<8xf32> to vector<8x1xf32>
    %cst_89 = arith.constant 3.200000e+01 : f32
    %121 = vector.broadcast %cst_89 : f32 to vector<8x1xf32>
    %122 = arith.divf %120, %121 : vector<8x1xf32>
    %123 = vector.broadcast %122 : vector<8x1xf32> to vector<8x32xf32>
    %124 = arith.subf %114, %123 : vector<8x32xf32>
    %125 = arith.mulf %124, %124 : vector<8x32xf32>
    %cst_90 = arith.constant dense<0.000000e+00> : vector<8xf32>
    %126 = vector.multi_reduction <add>, %125, %cst_90 [1] : vector<8x32xf32> to vector<8xf32>
    %127 = vector.shape_cast %126 : vector<8xf32> to vector<8x1xf32>
    %cst_91 = arith.constant 3.200000e+01 : f32
    %128 = vector.broadcast %cst_91 : f32 to vector<8x1xf32>
    %129 = arith.divf %127, %128 : vector<8x1xf32>
    %130 = vector.broadcast %122 : vector<8x1xf32> to vector<8x32xf32>
    %131 = arith.subf %114, %130 : vector<8x32xf32>
    %cst_92 = arith.constant 9.99999974E-6 : f32
    %132 = vector.broadcast %cst_92 : f32 to vector<8x1xf32>
    %133 = arith.addf %129, %132 : vector<8x1xf32>
    %134 = math.rsqrt %133 : vector<8x1xf32>
    %135 = vector.broadcast %134 : vector<8x1xf32> to vector<8x32xf32>
    %136 = arith.mulf %131, %135 : vector<8x32xf32>
    %137 = vector.broadcast %116 : vector<1x32xf32> to vector<8x32xf32>
    %138 = arith.mulf %136, %137 : vector<8x32xf32>
    %139 = vector.broadcast %118 : vector<1x32xf32> to vector<8x32xf32>
    %140 = arith.addf %138, %139 : vector<8x32xf32>
    %c0_93 = arith.constant 0 : index
    %c0_94 = arith.constant 0 : index
    %c0_95 = arith.constant 0 : index
    %141 = vector.load %arg12[%c0_93, %c0_94, %c0_95] : memref<1x32x64xbf16, #tpu.memory_space<vmem>>, vector<1x32x64xbf16>
    %142 = vector.shape_cast %141 : vector<1x32x64xbf16> to vector<32x64xbf16>
    %143 = arith.truncf %140 : vector<8x32xf32> to vector<8x32xbf16>
    %cst_96 = arith.constant dense<0.000000e+00> : vector<8x64xf32>
    %144 = tpu.matmul %143, %142, %cst_96 {dimension_numbers = #tpu.dot_dimension_numbers<[1], [0], [0], [1], [0, 0, 1, 1], [], []>} : vector<8x32xbf16>, vector<32x64xbf16>, vector<8x64xf32> -> vector<8x64xf32>
    %c0_97 = arith.constant 0 : index
    %c0_98 = arith.constant 0 : index
    %c0_99 = arith.constant 0 : index
    %145 = vector.load %arg13[%c0_97, %c0_98, %c0_99] : memref<1x1x64xf32, #tpu.memory_space<vmem>>, vector<1x1x64xf32>
    %146 = vector.shape_cast %145 : vector<1x1x64xf32> to vector<1x64xf32>
    %147 = vector.broadcast %146 : vector<1x64xf32> to vector<8x64xf32>
    %148 = arith.addf %144, %147 : vector<8x64xf32>
    %cst_100 = arith.constant 0.000000e+00 : f32
    %149 = vector.broadcast %cst_100 : f32 to vector<8x64xf32>
    %150 = arith.maximumf %148, %149 : vector<8x64xf32>
    %c0_101 = arith.constant 0 : index
    %c0_102 = arith.constant 0 : index
    %c0_103 = arith.constant 0 : index
    %151 = vector.load %arg14[%c0_101, %c0_102, %c0_103] : memref<1x64x32xbf16, #tpu.memory_space<vmem>>, vector<1x64x32xbf16>
    %152 = vector.shape_cast %151 : vector<1x64x32xbf16> to vector<64x32xbf16>
    %153 = arith.truncf %150 : vector<8x64xf32> to vector<8x64xbf16>
    %cst_104 = arith.constant dense<0.000000e+00> : vector<8x32xf32>
    %154 = tpu.matmul %153, %152, %cst_104 {dimension_numbers = #tpu.dot_dimension_numbers<[1], [0], [0], [1], [0, 0, 1, 1], [], []>} : vector<8x64xbf16>, vector<64x32xbf16>, vector<8x32xf32> -> vector<8x32xf32>
    %c0_105 = arith.constant 0 : index
    %c0_106 = arith.constant 0 : index
    %c0_107 = arith.constant 0 : index
    %155 = vector.load %arg15[%c0_105, %c0_106, %c0_107] : memref<1x1x32xf32, #tpu.memory_space<vmem>>, vector<1x1x32xf32>
    %156 = vector.shape_cast %155 : vector<1x1x32xf32> to vector<1x32xf32>
    %157 = vector.broadcast %156 : vector<1x32xf32> to vector<8x32xf32>
    %158 = arith.addf %154, %157 : vector<8x32xf32>
    %159 = arith.addf %140, %158 : vector<8x32xf32>
    %c0_108 = arith.constant 0 : index
    %c0_109 = arith.constant 0 : index
    %c0_110 = arith.constant 0 : index
    %160 = vector.load %arg18[%c0_108, %c0_109, %c0_110] : memref<1x1x32xf32, #tpu.memory_space<vmem>>, vector<1x1x32xf32>
    %161 = vector.shape_cast %160 : vector<1x1x32xf32> to vector<1x32xf32>
    %c0_111 = arith.constant 0 : index
    %c0_112 = arith.constant 0 : index
    %c0_113 = arith.constant 0 : index
    %162 = vector.load %arg19[%c0_111, %c0_112, %c0_113] : memref<1x1x32xf32, #tpu.memory_space<vmem>>, vector<1x1x32xf32>
    %163 = vector.shape_cast %162 : vector<1x1x32xf32> to vector<1x32xf32>
    %cst_114 = arith.constant dense<0.000000e+00> : vector<8xf32>
    %164 = vector.multi_reduction <add>, %159, %cst_114 [1] : vector<8x32xf32> to vector<8xf32>
    %165 = vector.shape_cast %164 : vector<8xf32> to vector<8x1xf32>
    %cst_115 = arith.constant 3.200000e+01 : f32
    %166 = vector.broadcast %cst_115 : f32 to vector<8x1xf32>
    %167 = arith.divf %165, %166 : vector<8x1xf32>
    %168 = vector.broadcast %167 : vector<8x1xf32> to vector<8x32xf32>
    %169 = arith.subf %159, %168 : vector<8x32xf32>
    %170 = arith.mulf %169, %169 : vector<8x32xf32>
    %cst_116 = arith.constant dense<0.000000e+00> : vector<8xf32>
    %171 = vector.multi_reduction <add>, %170, %cst_116 [1] : vector<8x32xf32> to vector<8xf32>
    %172 = vector.shape_cast %171 : vector<8xf32> to vector<8x1xf32>
    %cst_117 = arith.constant 3.200000e+01 : f32
    %173 = vector.broadcast %cst_117 : f32 to vector<8x1xf32>
    %174 = arith.divf %172, %173 : vector<8x1xf32>
    %175 = vector.broadcast %167 : vector<8x1xf32> to vector<8x32xf32>
    %176 = arith.subf %159, %175 : vector<8x32xf32>
    %cst_118 = arith.constant 9.99999974E-6 : f32
    %177 = vector.broadcast %cst_118 : f32 to vector<8x1xf32>
    %178 = arith.addf %174, %177 : vector<8x1xf32>
    %179 = math.rsqrt %178 : vector<8x1xf32>
    %180 = vector.broadcast %179 : vector<8x1xf32> to vector<8x32xf32>
    %181 = arith.mulf %176, %180 : vector<8x32xf32>
    %182 = vector.broadcast %161 : vector<1x32xf32> to vector<8x32xf32>
    %183 = arith.mulf %181, %182 : vector<8x32xf32>
    %184 = vector.broadcast %163 : vector<1x32xf32> to vector<8x32xf32>
    %185 = arith.addf %183, %184 : vector<8x32xf32>
    %cst_119 = arith.constant 0.000000e+00 : f32
    %186 = vector.shape_cast %11 : vector<8x1xi1> to vector<8x1xi1>
    %187 = vector.broadcast %186 : vector<8x1xi1> to vector<8x32xi1>
    %188 = vector.broadcast %cst_119 : f32 to vector<8x32xf32>
    %189 = arith.select %187, %188, %185 : vector<8x32xi1>, vector<8x32xf32>
    %c0_120 = arith.constant 0 : index
    %c0_121 = arith.constant 0 : index
    %c0_122 = arith.constant 0 : index
    %c0_123 = arith.constant 0 : index
    %190 = vector.load %arg20[%c0_120, %c0_121, %c0_122, %c0_123] : memref<1x1x8x32xf32, #tpu.memory_space<vmem>>, vector<1x1x8x32xf32>
    %191 = vector.shape_cast %190 : vector<1x1x8x32xf32> to vector<8x32xf32>
    %192 = vector.shape_cast %189 : vector<8x32xf32> to vector<1x1x8x32xf32>
    tpu.vector_store %arg20[%c0_120, %c0_121, %c0_122, %c0_123], %192 {strides = array<i32>} : memref<1x1x8x32xf32, #tpu.memory_space<vmem>>, vector<1x1x8x32xf32>,
    return
  }
  func.func @transform_0(%arg0: i32, %arg1: memref<2xi32, #tpu.memory_space<smem>>) -> (i32, i32, i32) {
    %c0_i32 = arith.constant 0 : i32
    %c0_i32_0 = arith.constant 0 : i32
    %c0_i32_1 = arith.constant 0 : i32
    return %arg0, %c0_i32, %c0_i32_0 : i32, i32, i32
  }
  func.func @transform_1(%arg0: i32, %arg1: memref<2xi32, #tpu.memory_space<smem>>) -> (i32, i32) {
    %c0_i32 = arith.constant 0 : i32
    %c0_i32_0 = arith.constant 0 : i32
    %c0_i32_1 = arith.constant 0 : i32
    return %c0_i32, %c0_i32_0 : i32, i32
  }
  func.func @transform_2(%arg0: i32, %arg1: memref<2xi32, #tpu.memory_space<smem>>) -> (i32, i32, i32, i32) {
    %c0_i32 = arith.constant 0 : i32
    %c0_i32_0 = arith.constant 0 : i32
    %c0_i32_1 = arith.constant 0 : i32
    %c0_i32_2 = arith.constant 0 : i32
    %c0_i32_3 = arith.constant 0 : i32
    return %c0_i32, %c0_i32_0, %c0_i32_1, %c0_i32_2 : i32, i32, i32, i32
  }
  func.func @transform_3(%arg0: i32, %arg1: memref<2xi32, #tpu.memory_space<smem>>) -> (i32, i32, i32, i32) {
    %c0_i32 = arith.constant 0 : i32
    %c0_i32_0 = arith.constant 0 : i32
    %c0_i32_1 = arith.constant 0 : i32
    %c0_i32_2 = arith.constant 0 : i32
    %c0_i32_3 = arith.constant 0 : i32
    return %c0_i32, %c0_i32_0, %c0_i32_1, %c0_i32_2 : i32, i32, i32, i32
  }
  func.func @transform_4(%arg0: i32, %arg1: memref<2xi32, #tpu.memory_space<smem>>) -> (i32, i32, i32, i32) {
    %c0_i32 = arith.constant 0 : i32
    %c0_i32_0 = arith.constant 0 : i32
    %c0_i32_1 = arith.constant 0 : i32
    %c0_i32_2 = arith.constant 0 : i32
    %c0_i32_3 = arith.constant 0 : i32
    return %c0_i32, %c0_i32_0, %c0_i32_1, %c0_i32_2 : i32, i32, i32, i32
  }
  func.func @transform_5(%arg0: i32, %arg1: memref<2xi32, #tpu.memory_space<smem>>) -> (i32, i32, i32, i32) {
    %c0_i32 = arith.constant 0 : i32
    %c0_i32_0 = arith.constant 0 : i32
    %c0_i32_1 = arith.constant 0 : i32
    %c0_i32_2 = arith.constant 0 : i32
    %c0_i32_3 = arith.constant 0 : i32
    return %c0_i32, %c0_i32_0, %c0_i32_1, %c0_i32_2 : i32, i32, i32, i32
  }
  func.func @transform_6(%arg0: i32, %arg1: memref<2xi32, #tpu.memory_space<smem>>) -> (i32, i32, i32, i32) {
    %c0_i32 = arith.constant 0 : i32
    %c0_i32_0 = arith.constant 0 : i32
    %c0_i32_1 = arith.constant 0 : i32
    %c0_i32_2 = arith.constant 0 : i32
    %c0_i32_3 = arith.constant 0 : i32
    return %c0_i32, %c0_i32_0, %c0_i32_1, %c0_i32_2 : i32, i32, i32, i32
  }
  func.func @transform_7(%arg0: i32, %arg1: memref<2xi32, #tpu.memory_space<smem>>) -> (i32, i32, i32, i32) {
    %c0_i32 = arith.constant 0 : i32
    %c0_i32_0 = arith.constant 0 : i32
    %c0_i32_1 = arith.constant 0 : i32
    %c0_i32_2 = arith.constant 0 : i32
    %c0_i32_3 = arith.constant 0 : i32
    return %c0_i32, %c0_i32_0, %c0_i32_1, %c0_i32_2 : i32, i32, i32, i32
  }
  func.func @transform_8(%arg0: i32, %arg1: memref<2xi32, #tpu.memory_space<smem>>) -> (i32, i32, i32, i32) {
    %c0_i32 = arith.constant 0 : i32
    %c0_i32_0 = arith.constant 0 : i32
    %c0_i32_1 = arith.constant 0 : i32
    %c0_i32_2 = arith.constant 0 : i32
    %c0_i32_3 = arith.constant 0 : i32
    return %c0_i32, %c0_i32_0, %c0_i32_1, %c0_i32_2 : i32, i32, i32, i32
  }
  func.func @transform_9(%arg0: i32, %arg1: memref<2xi32, #tpu.memory_space<smem>>) -> (i32, i32, i32) {
    %c0_i32 = arith.constant 0 : i32
    %c0_i32_0 = arith.constant 0 : i32
    %c0_i32_1 = arith.constant 0 : i32
    %c0_i32_2 = arith.constant 0 : i32
    return %c0_i32, %c0_i32_0, %c0_i32_1 : i32, i32, i32
  }
  func.func @transform_10(%arg0: i32, %arg1: memref<2xi32, #tpu.memory_space<smem>>) -> (i32, i32, i32) {
    %c0_i32 = arith.constant 0 : i32
    %c0_i32_0 = arith.constant 0 : i32
    %c0_i32_1 = arith.constant 0 : i32
    %c0_i32_2 = arith.constant 0 : i32
    return %c0_i32, %c0_i32_0, %c0_i32_1 : i32, i32, i32
  }
  func.func @transform_11(%arg0: i32, %arg1: memref<2xi32, #tpu.memory_space<smem>>) -> (i32, i32, i32) {
    %c0_i32 = arith.constant 0 : i32
    %c0_i32_0 = arith.constant 0 : i32
    %c0_i32_1 = arith.constant 0 : i32
    %c0_i32_2 = arith.constant 0 : i32
    return %c0_i32, %c0_i32_0, %c0_i32_1 : i32, i32, i32
  }
  func.func @transform_12(%arg0: i32, %arg1: memref<2xi32, #tpu.memory_space<smem>>) -> (i32, i32, i32) {
    %c0_i32 = arith.constant 0 : i32
    %c0_i32_0 = arith.constant 0 : i32
    %c0_i32_1 = arith.constant 0 : i32
    %c0_i32_2 = arith.constant 0 : i32
    return %c0_i32, %c0_i32_0, %c0_i32_1 : i32, i32, i32
  }
  func.func @transform_13(%arg0: i32, %arg1: memref<2xi32, #tpu.memory_space<smem>>) -> (i32, i32, i32) {
    %c0_i32 = arith.constant 0 : i32
    %c0_i32_0 = arith.constant 0 : i32
    %c0_i32_1 = arith.constant 0 : i32
    %c0_i32_2 = arith.constant 0 : i32
    return %c0_i32, %c0_i32_0, %c0_i32_1 : i32, i32, i32
  }
  func.func @transform_14(%arg0: i32, %arg1: memref<2xi32, #tpu.memory_space<smem>>) -> (i32, i32, i32) {
    %c0_i32 = arith.constant 0 : i32
    %c0_i32_0 = arith.constant 0 : i32
    %c0_i32_1 = arith.constant 0 : i32
    %c0_i32_2 = arith.constant 0 : i32
    return %c0_i32, %c0_i32_0, %c0_i32_1 : i32, i32, i32
  }
  func.func @transform_15(%arg0: i32, %arg1: memref<2xi32, #tpu.memory_space<smem>>) -> (i32, i32, i32) {
    %c0_i32 = arith.constant 0 : i32
    %c0_i32_0 = arith.constant 0 : i32
    %c0_i32_1 = arith.constant 0 : i32
    %c0_i32_2 = arith.constant 0 : i32
    return %c0_i32, %c0_i32_0, %c0_i32_1 : i32, i32, i32
  }
  func.func @transform_16(%arg0: i32, %arg1: memref<2xi32, #tpu.memory_space<smem>>) -> (i32, i32, i32) {
    %c0_i32 = arith.constant 0 : i32
    %c0_i32_0 = arith.constant 0 : i32
    %c0_i32_1 = arith.constant 0 : i32
    %c0_i32_2 = arith.constant 0 : i32
    return %c0_i32, %c0_i32_0, %c0_i32_1 : i32, i32, i32
  }
  func.func @transform_17(%arg0: i32, %arg1: memref<2xi32, #tpu.memory_space<smem>>) -> (i32, i32, i32) {
    %c0_i32 = arith.constant 0 : i32
    %c0_i32_0 = arith.constant 0 : i32
    %c0_i32_1 = arith.constant 0 : i32
    %c0_i32_2 = arith.constant 0 : i32
    return %c0_i32, %c0_i32_0, %c0_i32_1 : i32, i32, i32
  }
  func.func @transform_18(%arg0: i32, %arg1: memref<2xi32, #tpu.memory_space<smem>>) -> (i32, i32, i32, i32) {
    %c0_i32 = arith.constant 0 : i32
    %c0_i32_0 = arith.constant 0 : i32
    %c0_i32_1 = arith.constant 0 : i32
    %c0_i32_2 = arith.constant 0 : i32
    return %arg0, %c0_i32, %c0_i32_0, %c0_i32_1 : i32, i32, i32, i32
  }
}

</mosaic_0001>

<bundles_post_ra>
// kernel: tpu_custom_call.1
= control target key start
LH: loop header
LB: loop body
LE: loop exit
PB: predicated region body
PF: predicated region fallthrough
CT: control target
= control target key end

     0   :  { %s2392_s0 = inlined_call_operand.vmem [shape: s32[2], index: 0, kind: input, shape index: {}]   ;;  %s2393_s1 = inlined_call_operand.vmem [shape: f32[2,8,32], index: 1, kind: input, shape index: {}]   ;;  %s2394_s2 = inlined_call_operand.vmem [shape: f32[8,32], index: 2, kind: input, shape index: {}]   ;;  %s2395_s3 = inlined_call_operand.vmem [shape: bf16[1,2,32,16], index: 3, kind: input, shape index: {}]   ;;  %s2396_s4 = inlined_call_operand.vmem [shape: f32[1,2,1,16], index: 4, kind: input, shape index: {}]   ;;  %s2397_s5 = inlined_call_operand.vmem [shape: bf16[1,2,32,16], index: 5, kind: input, shape index: {}]   ;;  %s2398_s6 = inlined_call_operand.vmem [shape: f32[1,2,1,16], index: 6, kind: input, shape index: {}]   ;;  %s2399_s7 = inlined_call_operand.vmem [shape: bf16[1,2,32,16], index: 7, kind: input, shape index: {}]   ;;  %s2400_s8 = inlined_call_operand.vmem [shape: f32[1,2,1,16], index: 8, kind: input, shape index: {}]   ;;  %s2401_s9 = inlined_call_operand.vmem [shape: bf16[1,2,16,32], index: 9, kind: input, shape index: {}]   ;;  %s2402_s10 = inlined_call_operand.vmem [shape: f32[1,1,32], index: 10, kind: input, shape index: {}]   ;;  %s2403_s11 = inlined_call_operand.vmem [shape: bf16[1,32,64], index: 11, kind: input, shape index: {}]   ;;  %s2404_s12 = inlined_call_operand.vmem [shape: f32[1,1,64], index: 12, kind: input, shape index: {}]   ;;  %s2405_s13 = inlined_call_operand.vmem [shape: bf16[1,64,32], index: 13, kind: input, shape index: {}]   ;;  %s2406_s14 = inlined_call_operand.vmem [shape: f32[1,1,32], index: 14, kind: input, shape index: {}]   ;;  %s2407_s15 = inlined_call_operand.vmem [shape: f32[1,1,32], index: 15, kind: input, shape index: {}]   ;;  %s2408_s16 = inlined_call_operand.vmem [shape: f32[1,1,32], index: 16, kind: input, shape index: {}]   ;;  %s2409_s17 = inlined_call_operand.vmem [shape: f32[1,1,32], index: 17, kind: input, shape index: {}]   ;;  %s2410_s18 = inlined_call_operand.vmem [shape: f32[1,1,32], index: 18, kind: input, shape index: {}]   ;;  %s2411_s19 = inlined_call_operand.hbm [shape: f32[2,1,8,32], index: 19, kind: output, shape index: {}]  }
   0x1   :  { %2418 = sst [smem:[#allocation13_spill]] %s2392_s0 }
   0x2   :  { %2419 = sst [smem:[#allocation14_spill]] %s2393_s1  ;;  %s2424_s20 = sld [smem:[#allocation13_spill]] }
   0x3   :  { %2420 = sst [smem:[#allocation15_spill]] %s2394_s2 }
   0x4   :  { %2421 = sst [smem:[#allocation16_spill]] %s2395_s3 }
   0x5   :  { %2422 = sst [smem:[#allocation17_spill]] %s2396_s4 }
   0x6   :  { %2423 = sst [smem:[#allocation18_spill]] %s2404_s12 }
   0x8   :  { %s24_s12 = sshll.u32 %s2424_s20, 4  ;;  %s25_s12 = int_to_ptr.vmem [resolvable:$true] %s24_s12 }
   0x9   :  { %s1895_s21 = scalar_lea.vmem %s25_s12, 16  ;;  %p1900_p1 = scmp.lt.s32.totalorder %s25_s12, %s25_s12 }
   0xa   :  { %p1896_p0 = scmp.ne.s32.totalorder %s25_s12, %s1895_s21  ;;  %p1901_p2 = scmp.lt.s32.totalorder %s1895_s21, %s1895_s21 }
   0xc   :  { %p1902_p3 = por %p1901_p2, %p1900_p1 }
   0xe   :  { %p1903_p4 = pnand %p1902_p3, %p1896_p0 }
  0x10   :  { %1906 = shalt.err (!%p1903_p4)  }
  0x11   :  { %s1973_s1 = smov [#allocation3]  }
  0x12   :  { %27 = dma.vmem_to_smem %s25_s12, 16, %s1973_s1, [#allocation2] }
  0x13   :  { %1951 = dma.done.wait [#allocation2], 16 }
  0x14   :  { %1952 = vsyncadd [#allocation2], 4294967280 }
  0x15   :  { %29 = sfence }
  0x16   :  { %30 = vsyncpa [#allocation5], 0 }
  0x17   :  { %32 = vsyncpa [#allocation5 + $0x1], 0  ;;  %s2080_s22 = smov 0   ;;  %s2082_s2 = smov 0  }
  0x18   :  { %s2084_s23 = smov 0   ;;  %s2086_s24 = smov 0  }
  0x19 LB: > { %2425 = sst [smem:[#allocation8_spill]] %s1959_s22  ;;  %s2101_s12 = sadd.s32 4294967295, %s1971_s24   ;;  %s1971_s24 = sphi %s2086_s24, %s2443_s24   ;;  %s1967_s23 = sphi %s2084_s23, %s2448_s23   ;;  %s1963_s2 = sphi %s2082_s2, %s2447_s2   ;;  %s1959_s22 = sphi %s2080_s22, %s2446_s22  }
  0x1a   : > { %2426 = sst [smem:[#allocation9_spill]] %s1967_s23  ;;  %s1605_s25 = sadd.s32 4294967294, %s1971_s24  }
  0x1b   : > { %s2105_s3 = sadd.s32 1, %s1971_s24   ;;  %s428_s26 = sadd.s32 1, %s1967_s23 }
  0x1c   : > { %2427 = sst [smem:[#allocation10_spill]] %s2105_s3  ;;  %s425_s27 = ssub.s32 %s1971_s24, %s2105_s3 }
  0x1d   : > { %p438_p5 = scmp.ne.s32.totalorder %s1967_s23, %s1963_s2  ;;  %p426_p6 = scmp.eq.s32.totalorder %s425_s27, 0 }
  0x1e   : > { %p439_p7 = scmp.eq.s32.totalorder %s2101_s12, 1  ;;  %p444_p8 = scmp.ne.s32.totalorder %s1963_s2, %s1959_s22 }
  0x1f   : > { %p445_p9 = scmp.eq.s32.totalorder %s1605_s25, 1  ;;  %p1608_p12 = scmp.ge.s32.totalorder %s1971_s24, 1 }
  0x20   : > { %s2116_s28 = scalar_select %p426_p6, %s1967_s23, %s428_s26  }
  0x21   : > { %p2118_p10 = por %p439_p7, %p438_p5  ;;  %p2122_p11 = por %p445_p9, %p444_p8 }
  0x22   : > { %2428 = sst [smem:[#allocation11_spill]] %s2116_s28  ;;  %p521_p13 = scmp.lt.s32.totalorder %s1971_s24, 3 }
  0x23   : > { %s2430_s0 = scalar_select %p2122_p11, 1, 0 }
  0x24   : > { %p522_p0 = pnand %p1608_p12, %p521_p13 }
  0x25   : > { %2431 = sst [smem:[#allocation12_spill]] %s2430_s0  ;;  %v1863_v0 = vld [vmem:[%s2397_s5] sm:$0xff] (!%p522_p0)   ;;  %v1974_v1 = vmov (!%p522_p0), 0.0   ;;  %v1864_v2 = vld [vmem:[%s2397_s5 + $0x8] sm:$0xff] (!%p522_p0)   ;;  %s2432_s27 = sld [smem:[#allocation16_spill]] (!%p522_p0)  ;;  %vm1975_vm0 = vmmov (!%p522_p0), 0   ;;  %v583_v24 = vlaneseq (!%p522_p0) }
  0x26   : > { %525 = sbr.rel (%p522_p0) target bundleno = 3081 (0xc09), region = 92  ;;  %1725 = vmatprep.subr.bf16.mxu1 (!%p522_p0), %v1974_v1  ;;  %1717 = vmatprep.subr.bf16.mxu0 (!%p522_p0), %v1974_v1  ;;  %p574_p1 = scmp.lt.s32.totalorder (!%p522_p0), %s2101_s12, 1  ;;  %vm614_vm1 = vcmask (!%p522_p0), 261120   ;;  %v1615_v9 = vld [vmem:[%s2398_s6] ss:$0 sm:$0xff] (!%p522_p0)  ;;  %vm786_vm2 = vcmask (!%p522_p0), 130048  }
  0x27   : > { %1726 = vmatpush3.bf16.msra.mxu1 (!%p522_p0), %v1863_v0  ;;  %1729 = vmatprep.mubr.msk.bf16.mxu1 (!%p522_p0), %vm1975_vm0, %v1974_v1  ;;  %s2433_s28 = sld [smem:[#allocation15_spill]] (!%p522_p0)  ;;  %s2434_s0 = sld [smem:[#allocation14_spill]] (!%p522_p0)  ;;  %v588_v25 = vshrl.u32 (!%p522_p0), %v583_v24, 7  ;;  %v1867_v28 = vld [vmem:[%s2399_s7] sm:$0xff] (!%p522_p0)   ;;  %v1868_v29 = vld [vmem:[%s2399_s7 + $0x8] sm:$0xff] (!%p522_p0)   ;;  %v584_v30 = vand.u32 (!%p522_p0), 127, %v583_v24 }
  0x28   : > { %1727 = vmatprep.subr.bf16.mxu1 (!%p522_p0), %v1974_v1  ;;  %1721 = vmatprep.mubr.msk.bf16.mxu0 (!%p522_p0), %vm1975_vm0, %v1974_v1  ;;  %s2435_s4 = sld [smem:[#allocation17_spill]] (!%p522_p0)  ;;  %vm837_vm5 = vcmask (!%p522_p0), 64512   ;;  %v1619_v47 = vld [vmem:[%s2400_s8] ss:$0 sm:$0xff] (!%p522_p0)  ;;  %vm854_vm6 = vcmask (!%p522_p0), 1043456   ;;  %v1869_v57 = vld [vmem:[%s2397_s5 + $0x10] sm:$0xff] (!%p522_p0)  }
  0x29   : > { %v1870_v59 = vld [vmem:[%s2397_s5 + $0x18] sm:$0xff] (!%p522_p0)   ;;  %s2440_s25 = sld [smem:[#allocation18_spill]] (!%p522_p0)  ;;  %vm1454_vm7 = vcmask (!%p522_p0), 523264   ;;  %s571_s23 = sand.u32 (!%p522_p0), 1, %s1963_s2  }
  0x2a   : > { %s1609_s3 = sshll.u32 (!%p522_p0), %s571_s23, 3  ;;  %s1676_s21 = sshll.u32 (!%p522_p0), %s2101_s12, 7 }
  0x2b   : > { %v1865_v3 = vld [vmem:[%s2432_s27] sm:$0xff] (!%p522_p0)   ;;  %v1866_v4 = vld [vmem:[%s2432_s27 + $0x8] sm:$0xff] (!%p522_p0)   ;;  %1728 = vmatpush3.bf16.msra.mxu1 (!%p522_p0), %v1864_v2  ;;  %v1871_v52 = vld [vmem:[%s2432_s27 + $0x10] sm:$0xff] (!%p522_p0)  }
  0x2c   : > { %1718 = vmatpush3.bf16.msra.mxu0 (!%p522_p0), %v1865_v3  ;;  %1741 = vmatprep.subr.bf16.mxu1 (!%p522_p0), %v1974_v1  ;;  %v1872_v53 = vld [vmem:[%s2432_s27 + $0x18] sm:$0xff] (!%p522_p0)  }
  0x2d   : > { %s575_s30 = scalar_select %p574_p1, %s2101_s12, 1  ;;  %1719 = vmatprep.subr.bf16.mxu0 %v1974_v1  ;;  %v581_v5 = vld [vmem:[%s2433_s28] sm:$0xff] }
  0x2e   : > { %v1611_v16 = vld [vmem:[%s2435_s4] ss:$0 sm:$0xff]  ;;  %s1533_s28 = scalar_lea.sflag [#allocation5], %s571_s23 }
  0x2f   : > { %s1610_s1 = sshll.u32 %s575_s30, 3 }
  0x30   : > { %s577_s22 = scalar_lea.vmem %s2434_s0, %s1610_s1  ;;  %1720 = vmatpush3.bf16.msra.mxu0 %v1866_v4  ;;  %s579_s0 = sld [smem:[#allocation3 + %s2101_s12]] }
  0x31   : > { %v580_v6 = vld [vmem:[%s577_s22] sm:$0xff]  ;;  %1733 = vmatprep.subr.bf16.mxu0 %v1974_v1  ;;  %s573_s1 = scalar_lea.vmem [#allocation4], %s1609_s3  ;;  %s1976_s3 = smov [#allocation4]  }
  0x32   : > { %v2157_v7 = vadd.f32 %v581_v5, %v580_v6  ;;  %v1639_v5 = vld [vmem:[%s2398_s6 + $0x1] ss:$0 sm:$0xff] }
  0x34   : > { %v2162_v8 = vpack.c.bf16 %v2157_v7, %v2157_v7 }
  0x36   : > { %1730 = vmatmul.mubr.msk.bf16.vlgmr.msra.gmra.mrb[0].mxu1 %vm614_vm1, %v2162_v8  ;;  %1722 = vmatmul.mubr.msk.bf16.vlgmr.msra.gmra.mrb[0].mxu0 %vm614_vm1, %v2162_v8  ;;  %v585_v26 = vstv %s579_s0  ;;  %s1911_s0 = sshll.u32 %s1976_s3, 4  ;;  %s1912_s0 = int_to_ptr.vmem [resolvable:$false] %s1911_s0 }
  0x37   : > { %1743 = vmatprep.mubr.msk.bf16.mxu1 %vm1975_vm0, %v1974_v1  ;;  %1737 = vmatprep.mubr.msk.bf16.mxu0 %vm1975_vm0, %v1974_v1  ;;  %vm2184_vm3 = vcmp.ge.s32.totalorder %v588_v25, %v585_v26  ;;  %vm2200_vm4 = vcmp.ge.s32.totalorder %v584_v30, %v585_v26  ;;  %s1913_s30 = scalar_lea.vmem %s1912_s0, 256 }
  0x38   : > { %1734 = vmatpush3.bf16.msra.mxu0 %v1867_v28  ;;  %v1648_v28 = vld [vmem:[%s2400_s8 + $0x1] ss:$0 sm:$0xff] }
  0x39   : > { %1735 = vmatprep.subr.bf16.mxu0 %v1974_v1 }
  0x3c   : > { %1736 = vmatpush3.bf16.msra.mxu0 %v1868_v29 }
  0x3d   : > { %1747 = vmatprep.subr.bf16.mxu0 %v1974_v1 }
  0x3f   : > { %1738 = vmatmul.mubr.msk.bf16.vlgmr.msra.gmra.mrb[4].mxu0 %vm614_vm1, %v2162_v8 }
  0x40   : > { %1749 = vmatprep.mubr.msk.bf16.mxu0 %vm1975_vm0, %v1974_v1 }
 0x109   : > { %v715_v10 = vpop.f32.mrb[0].mxu1  ;;  %v652_v11 = vpop.f32.mrb[0].mxu0 }
 0x10a   : > { %v716_v12 = vadd.f32 %v1615_v9, %v715_v10  ;;  %v1731_v13 = vpop.f32.mrb[1].mxu1  ;;  %v1723_v14 = vpop.f32.mrb[1].mxu0  ;;  %v653_v22 = vadd.f32 %v1611_v16, %v652_v11 }
 0x10b   : > { %v718_v15 = vpop.f32.mrb[2].mxu1  ;;  %v655_v17 = vpop.f32.mrb[2].mxu0 }
 0x10c   : > { %v785_v18 = vpack.c.bf16 %v716_v12, %v716_v12  ;;  %v1732_v19 = vpop.f32.mrb[3].mxu1  ;;  %v1724_v20 = vpop.f32.mrb[3].mxu0  ;;  %v784_v23 = vpack.c.bf16 %v653_v22, %v653_v22  ;;  %v1630_v12 = vld [vmem:[%s2435_s4 + $0x1] ss:$0 sm:$0xff]  ;;  %s2347_s4 = scalar_lea.hbm %s2411_s19, %s1676_s21 }
 0x10d   : > { %v1874_v19 = vld [vmem:[%s2399_s7 + $0x18] sm:$0xff]  }
 0x10e   : > { %v791_v21 = vsel %vm786_vm2, %v785_v18, 0  ;;  %v1873_v18 = vld [vmem:[%s2399_s7 + $0x10] sm:$0xff]  }
 0x10f   : > { %1742 = vmatpush3.bf16.xpose.msra.mxu1 %v791_v21 }
 0x110   : > { %1753 = vmatprep.subr.bf16.mxu1 %v1974_v1 }
 0x112   : > { %v778_v44 = vpop.f32.mrb[4].mxu0 }
 0x113   : > { %v1739_v45 = vpop.f32.mrb[5].mxu0  ;;  %v779_v49 = vadd.f32 %v1619_v47, %v778_v44  ;;  %v1875_v44 = vld [vmem:[%s2401_s9] sm:$0xff]  }
 0x114   : > { %v781_v46 = vpop.f32.mrb[6].mxu0 }
 0x115   : > { %v1740_v48 = vpop.f32.mrb[7].mxu0  ;;  %v849_v50 = vpack.c.bf16 %v779_v49, %v779_v49 }
 0x116   : > { %1744 = vmatmul.mubr.msk.bf16.vlgmr.msra.gmra.mrb[4].mxu1 %vm786_vm2, %v784_v23 }
 0x117   : > { %1757 = vmatprep.mubr.msk.bf16.mxu1 %vm1975_vm0, %v1974_v1  ;;  %v856_v51 = vsel %vm854_vm6, %v849_v50, 0  ;;  %1754 = vmatpush3.bf16.msra.mxu1 %v1871_v52 }
 0x118   : > { %1748 = vmatpush3.bf16.msra.mxu0 %v856_v51  ;;  %1755 = vmatprep.subr.bf16.mxu1 %v1974_v1 }
 0x119   : > { %1761 = vmatprep.subr.bf16.mxu0 %v1974_v1 }
 0x11b   : > { %1756 = vmatpush3.bf16.msra.mxu1 %v1872_v53 }
 0x11c   : > { %1769 = vmatprep.subr.bf16.mxu1 %v1974_v1 }
 0x11e   : > { %1758 = vmatmul.mubr.msk.bf16.vlgmr.msra.gmra.mrb[8].mxu1 %vm614_vm1, %v2162_v8 }
 0x11f   : > { %1773 = vmatprep.mubr.msk.bf16.mxu1 %vm1975_vm0, %v1974_v1  ;;  %1770 = vmatpush3.bf16.msra.mxu1 %v1873_v18  ;;  %v1662_v18 = vld [vmem:[%s2408_s16] ss:$0 sm:$0xff] }
 0x120   : > { %1771 = vmatprep.subr.bf16.mxu1 %v1974_v1 }
 0x123   : > { %1772 = vmatpush3.bf16.msra.mxu1 %v1874_v19 }
 0x124   : > { %1783 = vmatprep.subr.bf16.mxu1 %v1974_v1 }
 0x126   : > { %1774 = vmatmul.mubr.msk.bf16.vlgmr.msra.gmra.mrb[12].mxu1 %vm614_vm1, %v2162_v8 }
 0x127   : > { %1785 = vmatprep.mubr.msk.bf16.mxu1 %vm1975_vm0, %v1974_v1 }
 0x1e9   : > { %v827_v31 = vpop.f32.mrb[4].mxu1 }
 0x1ea   : > { %v833_v33 = vmul.f32 0.25, %v827_v31  ;;  %v1745_v34 = vpop.f32.mrb[5].mxu1 }
 0x1eb   : > { %v830_v35 = vpop.f32.mrb[6].mxu1 }
 0x1ec   : > { %v1746_v36 = vpop.f32.mrb[7].mxu1  ;;  %v836_v37 = vsel %vm2200_vm4, -1e+09, %v833_v33 }
 0x1ed   : > { %v838_v38 = vsel %vm837_vm5, %v836_v37, -inf }
 0x1ee   : > { %839 = vmax.xlane.f32.xlu0 %v838_v38 }
 0x1f1   : > { %v960_v60 = vpop.f32.mrb[8].mxu1 }
 0x1f2   : > { %v1759_v61 = vpop.f32.mrb[9].mxu1  ;;  %v961_v16 = vadd.f32 %v1630_v12, %v960_v60 }
 0x1f3   : > { %v963_v62 = vpop.f32.mrb[10].mxu1 }
 0x1f4   : > { %v1760_v63 = vpop.f32.mrb[11].mxu1  ;;  %v1096_v17 = vpack.c.bf16 %v961_v16, %v961_v16  ;;  %v1661_v16 = vld [vmem:[%s2407_s15] ss:$0 sm:$0xff] }
 0x1f9   : > { %v1090_v29 = vpop.f32.mrb[12].mxu1 }
 0x1fa   : > { %v1775_v30 = vpop.f32.mrb[13].mxu1 }
 0x1fb   : > { %v1093_v31 = vpop.f32.mrb[14].mxu1 }
 0x1fc   : > { %v1776_v34 = vpop.f32.mrb[15].mxu1 }
 0x27b   : > { %v840_v39 = vpop.xlane.xlu0 %839 }
 0x27c   : > { %v841_v40 = vsub.f32 %v836_v37, %v840_v39 }
 0x27e   : > { %v842_v41 = vmul.f32 1.442695, %v841_v40  ;;  %v1876_v40 = vld [vmem:[%s2401_s9 + $0x8] sm:$0xff]  }
 0x280   : > { %1883 = vpow2.f32 %v842_v41 }
 0x28a   : > { %v1884_v42 = vpop.eup %1883 }
 0x28b   : > { %v844_v43 = vsel %vm837_vm5, %v1884_v42, 0.0 }
 0x28c   : > { %845 = vadd.xlane.f32.xlu0 %v844_v43 }
 0x319   : > { %v846_v54 = vpop.xlane.xlu0 %845 }
 0x31a   : > { %1885 = vrcp.f32 %v846_v54 }
 0x324   : > { %v1886_v55 = vpop.eup %1885 }
 0x325   : > { %v848_v56 = vmul.f32 %v1886_v55, %v1884_v42 }
 0x327   : > { %v850_v58 = vpack.c.bf16 %v848_v56, %v848_v56 }
 0x329   : > { %1750 = vmatmul.mubr.msk.bf16.vlgmr.msra.gmra.mrb[8].mxu0 %vm837_vm5, %v850_v58 }
 0x32a   : > { %1762 = vmatpush3.bf16.msra.mxu0 %v1869_v57  ;;  %1765 = vmatprep.mubr.msk.bf16.mxu0 %vm1975_vm0, %v1974_v1  ;;  %v1660_v57 = vld [vmem:[%s2402_s10] ss:$0 sm:$0xff] }
 0x32b   : > { %1763 = vmatprep.subr.bf16.mxu0 %v1974_v1 }
 0x32e   : > { %1764 = vmatpush3.bf16.msra.mxu0 %v1870_v59 }
 0x32f   : > { %1777 = vmatprep.subr.bf16.mxu0 %v1974_v1 }
 0x331   : > { %1766 = vmatmul.mubr.msk.bf16.vlgmr.msra.gmra.mrb[12].mxu0 %vm614_vm1, %v2162_v8  ;;  %v1091_v8 = vadd.f32 %v1648_v28, %v1090_v29 }
 0x332   : > { %1779 = vmatprep.mubr.msk.bf16.mxu0 %vm1975_vm0, %v1974_v1 }
 0x333   : > { %v1157_v33 = vpack.c.bf16 %v1091_v8, %v1091_v8 }
 0x335   : > { %v1163_v35 = vsel %vm854_vm6, %v1157_v33, 0 }
 0x336   : > { %1784 = vmatpush3.bf16.msra.mxu1 %v1163_v35 }
 0x337   : > { %1795 = vmatprep.subr.bf16.mxu1 %v1974_v1 }
 0x3fc   : > { %v2240_v0 = vpop.f32.mrb[8].mxu0 }
 0x3fd   : > { %v1751_v2 = vpop.f32.mrb[9].mxu0  ;;  %v900_v46 = vpack.c.bf16 %v2240_v0, %v2240_v0 }
 0x3fe   : > { %v895_v3 = vpop.f32.mrb[10].mxu0 }
 0x3ff   : > { %v1752_v4 = vpop.f32.mrb[11].mxu0 }
 0x404   : > { %v1025_v6 = vpop.f32.mrb[12].mxu0 }
 0x405   : > { %v1026_v9 = vadd.f32 %v1639_v5, %v1025_v6  ;;  %v1767_v10 = vpop.f32.mrb[13].mxu0 }
 0x406   : > { %v1028_v11 = vpop.f32.mrb[14].mxu0  ;;  %v1879_v10 = vld [vmem:[%s2405_s13] sm:$0xff]  }
 0x407   : > { %v1097_v13 = vpack.c.bf16 %v1026_v9, %v1026_v9  ;;  %v1768_v14 = vpop.f32.mrb[15].mxu0  ;;  %v1877_v9 = vld [vmem:[%s2403_s11] sm:$0xff]   ;;  %v1880_v11 = vld [vmem:[%s2405_s13 + $0x8] sm:$0xff]  }
 0x409   : > { %v1102_v15 = vsel %vm786_vm2, %v1097_v13, 0 }
 0x40a   : > { %1778 = vmatpush3.bf16.xpose.msra.mxu0 %v1102_v15 }
 0x40b   : > { %1789 = vmatprep.subr.bf16.mxu0 %v1974_v1 }
 0x411   : > { %1780 = vmatmul.mubr.msk.bf16.vlgmr.msra.gmra.mrb[16].mxu0 %vm786_vm2, %v1096_v17 }
 0x412   : > { %1791 = vmatprep.mubr.msk.bf16.mxu0 %vm1975_vm0, %v1974_v1  ;;  %1790 = vmatpush3.bf16.msra.mxu0 %v1876_v40 }
 0x413   : > { %1801 = vmatprep.subr.bf16.mxu0 %v1974_v1 }
 0x4e4   : > { %v1138_v20 = vpop.f32.mrb[16].mxu0 }
 0x4e5   : > { %v1144_v21 = vmul.f32 0.25, %v1138_v20  ;;  %v1781_v22 = vpop.f32.mrb[17].mxu0 }
 0x4e6   : > { %v1141_v23 = vpop.f32.mrb[18].mxu0  ;;  %v1881_v22 = vld [vmem:[%s2405_s13 + $0x10] sm:$0xff]  }
 0x4e7   : > { %v1782_v24 = vpop.f32.mrb[19].mxu0  ;;  %v1145_v25 = vsel %vm2200_vm4, -1e+09, %v1144_v21  ;;  %v1882_v23 = vld [vmem:[%s2405_s13 + $0x18] sm:$0xff]  }
 0x4e8   : > { %v1146_v26 = vsel %vm837_vm5, %v1145_v25, -inf  ;;  %v1663_v24 = vld [vmem:[%s2440_s25] ss:$0 sm:$0xff]  ;;  %s1546_s25 = sshll.u32 %s573_s1, 4  ;;  %s2349_s25 = int_to_ptr.vmem [resolvable:$true] %s1546_s25 }
 0x4e9   : > { %1147 = vmax.xlane.f32.xlu1 %v1146_v26  ;;  %s1907_s12 = scalar_lea.vmem %s2349_s25, 128  ;;  %p1914_p5 = scmp.lt.s32.totalorder %s2349_s25, %s1912_s0 }
 0x4ea   : > { %p1908_p2 = scmp.ne.s32.totalorder %s2349_s25, %s1907_s12  ;;  %p1915_p6 = scmp.lt.s32.totalorder %s1913_s30, %s1907_s12 }
 0x4ec   : > { %p1909_p3 = pnand %p1908_p2, %p2118_p10  ;;  %p1916_p7 = por %p1915_p6, %p1914_p5 }
 0x4ee   : > { %p1910_p4 = pneg %p1909_p3 }
 0x4f0   : > { %p1917_p8 = pnand %p1916_p7, %p1910_p4 }
 0x576   : > { %v1148_v32 = vpop.xlane.xlu1 %1147 }
 0x577   : > { %v1149_v36 = vsub.f32 %v1145_v25, %v1148_v32 }
 0x579   : > { %v1150_v37 = vmul.f32 1.442695, %v1149_v36 }
 0x57b   : > { %1887 = vpow2.f32 %v1150_v37 }
 0x585   : > { %v1888_v38 = vpop.eup %1887 }
 0x586   : > { %v1152_v39 = vsel %vm837_vm5, %v1888_v38, 0.0 }
 0x587   : > { %1153 = vadd.xlane.f32.xlu1 %v1152_v39 }
 0x614   : > { %v1154_v41 = vpop.xlane.xlu1 %1153 }
 0x615   : > { %1889 = vrcp.f32 %v1154_v41 }
 0x61f   : > { %v1890_v42 = vpop.eup %1889 }
 0x620   : > { %v1156_v43 = vmul.f32 %v1890_v42, %v1888_v38 }
 0x622   : > { %v1158_v45 = vpack.c.bf16 %v1156_v43, %v1156_v43 }
 0x624   : > { %1786 = vmatmul.mubr.msk.bf16.vlgmr.msra.gmra.mrb[16].mxu1 %vm837_vm5, %v1158_v45 }
 0x625   : > { %1796 = vmatpush3.bf16.msra.mxu1 %v1875_v44  ;;  %1797 = vmatprep.mubr.msk.bf16.mxu1 %vm1975_vm0, %v1974_v1 }
 0x626   : > { %1809 = vmatprep.subr.bf16.mxu1 %v1974_v1 }
 0x62c   : > { %1798 = vmatmul.mubr.msk.bf16.vlgmr.msra.gmra.mrb[20].mxu1 %vm786_vm2, %v900_v46 }
 0x62d   : > { %1817 = vmatprep.mubr.msk.bf16.mxu1 %vm1975_vm0, %v1974_v1  ;;  %1810 = vmatpush3.bf16.msra.mxu1 %v1879_v10 }
 0x62e   : > { %1811 = vmatprep.subr.bf16.mxu1 %v1974_v1 }
 0x631   : > { %1812 = vmatpush3.bf16.msra.mxu1 %v1880_v11 }
 0x632   : > { %1813 = vmatprep.subr.bf16.mxu1 %v1974_v1 }
 0x635   : > { %1814 = vmatpush3.bf16.msra.mxu1 %v1881_v22 }
 0x636   : > { %1815 = vmatprep.subr.bf16.mxu1 %v1974_v1 }
 0x639   : > { %1816 = vmatpush3.bf16.msra.mxu1 %v1882_v23 }
 0x6f7   : > { %v1199_v47 = vpop.f32.mrb[16].mxu1 }
 0x6f8   : > { %v1208_v48 = vpack.c.bf16 %v1199_v47, %v1199_v47  ;;  %v1787_v49 = vpop.f32.mrb[17].mxu1 }
 0x6f9   : > { %v1202_v50 = vpop.f32.mrb[18].mxu1 }
 0x6fa   : > { %v1788_v51 = vpop.f32.mrb[19].mxu1  ;;  %1792 = vmatmul.mubr.msk.bf16.vlgmr.msra.gmra.mrb[20].mxu0 %vm786_vm2, %v1208_v48  ;;  %v1673_v48 = vld [vmem:[%s2409_s17] ss:$0 sm:$0xff] }
 0x6fb   : > { %1805 = vmatprep.mubr.msk.bf16.mxu0 %vm1975_vm0, %v1974_v1  ;;  %1802 = vmatpush3.bf16.msra.mxu0 %v1877_v9  ;;  %v1674_v50 = vld [vmem:[%s2410_s18] ss:$0 sm:$0xff] }
 0x6fc   : > { %1803 = vmatprep.subr.bf16.mxu0 %v1974_v1  ;;  %v1667_v1 = vld [vmem:[%s2406_s14] ss:$0 sm:$0xff] }
 0x6ff   : > { %v1301_v52 = vpop.f32.mrb[20].mxu1 }
 0x700   : > { %v1799_v53 = vpop.f32.mrb[21].mxu1 }
 0x701   : > { %v1304_v54 = vpop.f32.mrb[22].mxu1 }
 0x702   : > { %v1800_v55 = vpop.f32.mrb[23].mxu1 }
 0x7cd   : > { %v1252_v56 = vpop.f32.mrb[20].mxu0 }
 0x7ce   : > { %v1302_v58 = vadd.f32 %v1301_v52, %v1252_v56  ;;  %v1793_v59 = vpop.f32.mrb[21].mxu0 }
 0x7cf   : > { %v1255_v60 = vpop.f32.mrb[22].mxu0 }
 0x7d0   : > { %v1314_v61 = vadd.f32 %v1660_v57, %v1302_v58  ;;  %v1794_v62 = vpop.f32.mrb[23].mxu0 }
 0x7d2   : > { %v1315_v63 = vadd.f32 %v1314_v61, %v2157_v7  ;;  %v1878_v7 = vld [vmem:[%s2403_s11 + $0x8] sm:$0xff]  }
 0x7d3   : > { %1804 = vmatpush3.bf16.msra.mxu0 %v1878_v7 }
 0x7d4   : > { %v1318_v0 = vsel %vm614_vm1, %v1315_v63, 0.0 }
 0x7d5   : > { %1319 = vadd.xlane.f32.xlu0 %v1318_v0 }
 0x862   : > { %v1320_v2 = vpop.xlane.xlu0 %1319 }
 0x863   : > { %v1322_v3 = vmul.f32 0.03125, %v1320_v2 }
 0x865   : > { %v1323_v4 = vsub.f32 %v1315_v63, %v1322_v3 }
 0x867   : > { %v1324_v5 = vmul.f32 %v1323_v4, %v1323_v4 }
 0x869   : > { %v1325_v6 = vsel %vm614_vm1, %v1324_v5, 0.0 }
 0x86a   : > { %1326 = vadd.xlane.f32.xlu1 %v1325_v6 }
 0x8f7   : > { %v1327_v12 = vpop.xlane.xlu1 %1326 }
 0x8f8   : > { %v1328_v13 = vmul.f32 0.03125, %v1327_v12 }
 0x8fa   : > { %v1329_v14 = vadd.f32 1e-05, %v1328_v13 }
 0x8fc   : > { %1891 = vrsqrt.f32 %v1329_v14 }
 0x906   : > { %v1892_v15 = vpop.eup %1891 }
 0x907   : > { %v1331_v17 = vmul.f32 %v1892_v15, %v1323_v4 }
 0x909   : > { %v1338_v19 = vmul.f32 %v1661_v16, %v1331_v17 }
 0x90b   : > { %v1345_v20 = vadd.f32 %v1662_v18, %v1338_v19 }
 0x90d   : > { %v1350_v21 = vpack.c.bf16 %v1345_v20, %v1345_v20 }
 0x90f   : > { %1806 = vmatmul.mubr.msk.bf16.vlgmr.msra.gmra.mrb[24].mxu0 %vm614_vm1, %v1350_v21 }
 0x9e2   : > { %v1407_v25 = vpop.f32.mrb[24].mxu0 }
 0x9e3   : > { %v1408_v26 = vadd.f32 %v1663_v24, %v1407_v25  ;;  %v1807_v28 = vpop.f32.mrb[25].mxu0 }
 0x9e4   : > { %v1410_v29 = vpop.f32.mrb[26].mxu0 }
 0x9e5   : > { %v1413_v8 = vmax.f32 %v1408_v26, 0.0  ;;  %v1808_v30 = vpop.f32.mrb[27].mxu0 }
 0x9e7   : > { %v1422_v31 = vpack.c.bf16 %v1413_v8, %v1413_v8 }
 0x9e9   : > { %1818 = vmatmul.mubr.msk.bf16.vlgmr.msra.gmra.mrb[24].mxu1 %vm1454_vm7, %v1422_v31 }
 0xabc   : > { %v1492_v33 = vpop.f32.mrb[24].mxu1 }
 0xabd   : > { %v1493_v34 = vadd.f32 %v1667_v1, %v1492_v33  ;;  %v1819_v35 = vpop.f32.mrb[25].mxu1 }
 0xabe   : > { %v1495_v32 = vpop.f32.mrb[26].mxu1 }
 0xabf   : > { %v1820_v36 = vpop.f32.mrb[27].mxu1  ;;  %v1498_v37 = vadd.f32 %v1493_v34, %v1345_v20 }
 0xac1   : > { %v1501_v38 = vsel %vm614_vm1, %v1498_v37, 0.0 }
 0xac2   : > { %1502 = vadd.xlane.f32.xlu0 %v1501_v38 }
 0xb4f   : > { %v1503_v39 = vpop.xlane.xlu0 %1502 }
 0xb50   : > { %v1504_v40 = vmul.f32 0.03125, %v1503_v39 }
 0xb52   : > { %v1505_v41 = vsub.f32 %v1498_v37, %v1504_v40 }
 0xb54   : > { %v1506_v42 = vmul.f32 %v1505_v41, %v1505_v41 }
 0xb56   : > { %v1507_v43 = vsel %vm614_vm1, %v1506_v42, 0.0 }
 0xb57   : > { %1508 = vadd.xlane.f32.xlu1 %v1507_v43 }
 0xbe4   : > { %v1509_v44 = vpop.xlane.xlu1 %1508 }
 0xbe5   : > { %v1510_v45 = vmul.f32 0.03125, %v1509_v44 }
 0xbe7   : > { %v1511_v46 = vadd.f32 1e-05, %v1510_v45 }
 0xbe9   : > { %1893 = vrsqrt.f32 %v1511_v46 }
 0xbf3   : > { %v1894_v47 = vpop.eup %1893 }
 0xbf4   : > { %v1513_v49 = vmul.f32 %v1894_v47, %v1505_v41 }
 0xbf6   : > { %v1520_v51 = vmul.f32 %v1673_v48, %v1513_v49 }
 0xbf8   : > { %v1527_v52 = vadd.f32 %v1674_v50, %v1520_v51 }
 0xbfa   : > { %v1530_v53 = vsel %vm2184_vm3, 0.0, %v1527_v52 }
 0xbfb   : > { %1531 = vst.msk [vmem:[%s573_s1] sm:$0xff] %vm614_vm1, %v1530_v53 }
 0xbfc   : > { %1920 = shalt.err (!%p1917_p8)
}
 0xbfd   : > { %s1921_s23 = scalar_lea.hbm %s2347_s4, 128  ;;  %s1925_s1 = scalar_lea.hbm %s2411_s19, 256 }
 0xbfe   : > { %p1922_p9 = scmp.ne.s32.totalorder %s2347_s4, %s1921_s23  ;;  %p1926_p0 = scmp.lt.u32.totalorder %s2347_s4, %s2411_s19 }
 0xbff   : > { %p1927_p1 = scmp.lt.u32.totalorder %s1925_s1, %s1921_s23  ;;  %p1929_p3 = scmp.lt.u32.totalorder %s1921_s23, %s2347_s4 }
 0xc00   : > { %p1923_p12 = pnand %p1922_p9, %p2118_p10 }
 0xc01   : > { %p1928_p2 = por %p1927_p1, %p1926_p0 }
 0xc02   : > { %p1924_p13 = pneg %p1923_p12 }
 0xc03   : > { %p1930_p4 = por %p1929_p3, %p1928_p2 }
 0xc05   : > { %p1931_p5 = pnand %p1930_p4, %p1924_p13 }
 0xc07   : > { %1934 = shalt.err (!%p1931_p5)
}
 0xc08   : > { %1821 = dma.vmem_to_hbm [thread:$0]  (%p2118_p10), %s2349_s25, 128, %s2347_s4, %s1533_s28  }
 0xc09 PF: > { %s2441_s12 = sld [smem:[#allocation8_spill]]  ;;  %p1827_p6 = scmp.ge.s32.totalorder %s1971_s24, 2 }
 0xc0b   : > { %p1824_p7 = pnand %p1827_p6, %p2122_p11 }
 0xc0f   : > { %s1558_s0 = sand.u32 1, %s2441_s12  }
 0xc10   : > { %s1559_s30 = scalar_lea.sflag [#allocation5], %s1558_s0 }
 0xc11   : > { %1954 = dma.done.wait (!%p1824_p7), %s1559_s30, 128  }
 0xc12   : > { %1956 = vsyncadd (!%p1824_p7), %s1559_s30, 4294967168  ;;  %s2443_s24 = sld [smem:[#allocation10_spill]]  ;;  %s2444_s23 = sld [smem:[#allocation9_spill]] }
 0xc13   : > { %s2445_s20 = sld [smem:[#allocation11_spill]]  ;;  %s2446_s22 = smov %s1963_s2 }
 0xc18   : > { %p35_p8 = scmp.ge.s32.totalorder %s2443_s24, 4   ;;  %s2447_s2 = smov %s2444_s23 }
 0xc19   : > { %s2448_s23 = smov %s2445_s20 }
 0xc1a   :  { %37 = sbr.rel (!%p35_p8) target bundleno = 25 (0x19), region = 134 }
 0xc21   :  { %1564 = vsyncpa [#allocation5], 1 }
 0xc22   :  { %1566 = vsyncpa [#allocation5 + $0x1], 1 }

</bundles_post_ra>
